<compile_context>
chip_gen: v7x
topology: tpu7x:2x2x1
jax: 0.10.0
libtpu: 0.0.40
codegen_flags: <defaults>
</compile_context>

<pallas_src>
import functools

import jax
import jax.numpy as jnp
import numpy as np
from jax.experimental import pallas as pl
from jax.experimental.pallas import tpu as pltpu

_SQRT_2_OVER_PI = 0.7978845608028654
_GELU_C = 0.044715


def _round_up(x, m):
    return (x + m - 1) // m * m


def _gelu_tanh_f32(x):
    # tanh-form GELU (deviates from exact erf GELU by <~1e-3 abs). tanh goes
    # to the EUP slot, keeping the VALU cost per hidden element low. f32 math.
    u = _SQRT_2_OVER_PI * (x + _GELU_C * x * x * x)
    return 0.5 * x * (1.0 + jnp.tanh(u))


def ffn_kernel(x_ref, w1_ref, b1_ref, w2_ref, b2_ref, o_ref, acc_ref):
    k = pl.program_id(1)  # hidden-dim reduction axis (last grid axis)

    @pl.when(k == 0)
    def _init():
        # Initialize the f32 accumulator with the second bias (broadcast).
        acc_ref[...] = jnp.broadcast_to(
            b2_ref[...].astype(jnp.float32), acc_ref.shape)

    # GEMM1 on this hidden tile: (bm, E) @ (E, bh) -> (bm, bh), f32 MXU acc.
    h = jnp.dot(x_ref[...], w1_ref[...], preferred_element_type=jnp.float32)
    h = h + b1_ref[...]          # (1, bh) f32 bias broadcast
    h = _gelu_tanh_f32(h)        # GELU applied after the *complete* embed
                                 # reduction (only hidden is tiled).
    # TODO(synk): dropout omitted (identity at inference / p=0.0).
    # GEMM2 partial product: (bm, bh) @ (bh, E), accumulated in f32 scratch.
    acc_ref[...] += jnp.dot(h.astype(w2_ref.dtype), w2_ref[...],
                            preferred_element_type=jnp.float32)

    @pl.when(k == pl.num_programs(1) - 1)
    def _store():
        o_ref[...] = acc_ref[...].astype(o_ref.dtype)


def _pick_hidden_tile(hidden, max_tile=512):
    for cand in (512, 256, 128):
        if cand <= max_tile and hidden % cand == 0:
            return cand
    return hidden  # full extent (allowed by the (8,128) block rule)


def ffn_forward(x, w1, b1, w2, b2, *, block_m=512, block_h=None,
                interpret=False):
    """Fused FFN forward: gelu(x @ w1 + b1) @ w2 + b2.

    x: (..., embed); w1: (embed, hidden); b1: (hidden,)
    w2: (hidden, embed); b2: (embed,)
    """
    *lead, embed = x.shape
    hidden = w1.shape[1]
    assert w1.shape == (embed, hidden)
    assert b1.shape == (hidden,)
    assert w2.shape == (hidden, embed)
    assert b2.shape == (embed,)

    out_dtype = x.dtype
    # bf16 operands for the MXU (f32 accumulation inside the kernel).
    x2 = x.reshape(-1, embed).astype(jnp.bfloat16)
    w1b = w1.astype(jnp.bfloat16)
    w2b = w2.astype(jnp.bfloat16)
    b1_2d = b1.reshape(1, hidden).astype(jnp.float32)
    b2_2d = b2.reshape(1, embed).astype(jnp.float32)

    m = x2.shape[0]
    bm = min(block_m, _round_up(m, 8))
    bh = block_h if block_h is not None else _pick_hidden_tile(hidden)
    # Hidden must tile exactly: a ragged hidden tile would feed garbage
    # columns through the nonlinearity into the accumulator.
    assert hidden % bh == 0, "hidden_dim must be divisible by the hidden tile"

    grid = (pl.cdiv(m, bm), hidden // bh)

    out_itemsize = jnp.dtype(out_dtype).itemsize
    vmem_bytes = (
        2 * bm * embed * 2            # x tile (bf16, double-buffered)
        + 2 * embed * bh * 2          # w1 tile
        + 2 * bh * embed * 2          # w2 tile
        + 2 * (bh + embed) * 4        # biases (f32)
        + 2 * bm * embed * out_itemsize   # output tile
        + bm * embed * 4              # f32 accumulator scratch
        + 2 * bm * bh * 4             # hidden intermediate working set
    )
    vmem_limit = min(int(1.5 * vmem_bytes) + (4 << 20), 64 << 20)

    cost = pl.CostEstimate(
        flops=4 * m * embed * hidden,
        transcendentals=m * hidden,
        bytes_accessed=(m * embed * 2              # x (bf16)
                        + 2 * embed * hidden * 2   # w1 + w2 (bf16)
                        + (hidden + embed) * 4     # biases
                        + m * embed * out_itemsize))

    out = pl.pallas_call(
        ffn_kernel,
        out_shape=jax.ShapeDtypeStruct((m, embed), out_dtype),
        grid_spec=pltpu.PrefetchScalarGridSpec(
            num_scalar_prefetch=0,
            grid=grid,
            in_specs=[
                # activations: one row tile per i, constant across the hidden
                # axis (re-DMA'd only when i changes)
                pl.BlockSpec((bm, embed), lambda i, k: (i, 0)),
                # weight / bias tiles stream along the hidden axis
                pl.BlockSpec((embed, bh), lambda i, k: (0, k)),
                pl.BlockSpec((1, bh), lambda i, k: (0, k)),
                pl.BlockSpec((bh, embed), lambda i, k: (k, 0)),
                pl.BlockSpec((1, embed), lambda i, k: (0, 0)),
            ],
            out_specs=pl.BlockSpec((bm, embed), lambda i, k: (i, 0)),
            scratch_shapes=[pltpu.VMEM((bm, embed), jnp.float32)],
        ),
        compiler_params=pltpu.CompilerParams(
            dimension_semantics=("parallel", "arbitrary"),
            vmem_limit_bytes=vmem_limit),
        cost_estimate=cost,
        interpret=interpret,
    )(x2, w1b, b1_2d, w2b, b2_2d)

    return out.reshape(*lead, embed)


if __name__ == "__main__":
    key = jax.random.PRNGKey(0)
    k_x, k_w1, k_b1, k_w2, k_b2 = jax.random.split(key, 5)

    # Lane-dense small shapes; hidden > tile so the reduction axis is used.
    batch, seq, embed_dim, hidden_dim = 2, 256, 128, 512

    x = jax.random.normal(k_x, (batch, seq, embed_dim), dtype=jnp.float32)
    # Weights stored as (in, out) == torch Linear.weight.T; y = x @ W + b.
    w1 = jax.random.normal(k_w1, (embed_dim, hidden_dim), jnp.float32) * 0.02
    b1 = jax.random.normal(k_b1, (hidden_dim,), jnp.float32) * 0.02
    w2 = jax.random.normal(k_w2, (hidden_dim, embed_dim), jnp.float32) * 0.02
    b2 = jax.random.normal(k_b2, (embed_dim,), jnp.float32) * 0.02

    # block_m=256 / block_h=256 -> grid (2, 2): exercises both the parallel
    # row axis and the hidden-reduction accumulator.
    fwd = jax.jit(functools.partial(ffn_forward, block_m=256, block_h=256))
    out = jax.block_until_ready(fwd(x, w1, b1, w2, b2))

    # Plain-JAX reference (exact erf GELU, f32, HIGHEST precision). Loose
    # tolerance covers the intended bf16-MXU / tanh-GELU deviations.
    h_ref = jnp.dot(x.reshape(-1, embed_dim), w1,
                    precision=jax.lax.Precision.HIGHEST) + b1
    h_ref = jax.nn.gelu(h_ref, approximate=False)
    y_ref = (jnp.dot(h_ref, w2, precision=jax.lax.Precision.HIGHEST) + b2
             ).reshape(batch, seq, embed_dim)
    np.testing.assert_allclose(np.asarray(out), np.asarray(y_ref),
                               atol=2e-2, rtol=2e-2)

    print("KERNEL_OK")
</pallas_src>

<mosaic_0001>
module attributes {stable_mosaic.version = 11 : i64} {
  func.func @ffn_kernel(%arg0: i32, %arg1: i32, %arg2: memref<256x128xbf16, #tpu.memory_space<vmem>>, %arg3: memref<128x256xbf16, #tpu.memory_space<vmem>>, %arg4: memref<1x256xf32, #tpu.memory_space<vmem>>, %arg5: memref<256x128xbf16, #tpu.memory_space<vmem>>, %arg6: memref<1x128xf32, #tpu.memory_space<vmem>>, %arg7: memref<256x128xf32, #tpu.memory_space<vmem>>, %arg8: memref<256x128xf32, #tpu.memory_space<vmem>>) attributes {dimension_semantics = [#tpu.dimension_semantics<parallel>, #tpu.dimension_semantics<arbitrary>], iteration_bounds = array<i64: 2, 2>, scalar_prefetch = 0 : i64, scratch_operands = 1 : i64, tpu.core_type = #tpu.core_type<tc>, window_params = [{transform_indices = @transform_0, window_bounds = array<i64: 256, 128>}, {transform_indices = @transform_1, window_bounds = array<i64: 128, 256>}, {transform_indices = @transform_2, window_bounds = array<i64: 1, 256>}, {transform_indices = @transform_3, window_bounds = array<i64: 256, 128>}, {pipeline_mode = #tpu.pipeline_mode<synchronous>, transform_indices = @transform_4, window_bounds = array<i64: 1, 128>}, {transform_indices = @transform_5, window_bounds = array<i64: 256, 128>}]} {
    %c0_i32 = arith.constant 0 : i32
    %0 = arith.cmpi eq, %arg1, %c0_i32 : i32
    %1 = arith.extui %0 : i1 to i32
    %c0_i32_0 = arith.constant 0 : i32
    %2 = arith.cmpi ne, %1, %c0_i32_0 : i32
    scf.if %2 {
      %c0_18 = arith.constant 0 : index
      %c0_19 = arith.constant 0 : index
      %31 = vector.load %arg6[%c0_18, %c0_19] : memref<1x128xf32, #tpu.memory_space<vmem>>, vector<1x128xf32>
      %32 = vector.shape_cast %31 : vector<1x128xf32> to vector<1x128xf32>
      %33 = vector.broadcast %32 : vector<1x128xf32> to vector<256x128xf32>
      %c0_20 = arith.constant 0 : index
      %c0_21 = arith.constant 0 : index
      %34 = vector.load %arg8[%c0_20, %c0_21] : memref<256x128xf32, #tpu.memory_space<vmem>>, vector<256x128xf32>
      tpu.vector_store %arg8[%c0_20, %c0_21], %33 {strides = array<i32>} : memref<256x128xf32, #tpu.memory_space<vmem>>, vector<256x128xf32>,
    } else {
    }
    %c0 = arith.constant 0 : index
    %c0_1 = arith.constant 0 : index
    %3 = vector.load %arg2[%c0, %c0_1] : memref<256x128xbf16, #tpu.memory_space<vmem>>, vector<256x128xbf16>
    %c0_2 = arith.constant 0 : index
    %c0_3 = arith.constant 0 : index
    %4 = vector.load %arg3[%c0_2, %c0_3] : memref<128x256xbf16, #tpu.memory_space<vmem>>, vector<128x256xbf16>
    %cst = arith.constant dense<0.000000e+00> : vector<256x256xf32>
    %5 = tpu.matmul %3, %4, %cst {dimension_numbers = #tpu.dot_dimension_numbers<[1], [0], [0], [1], [0, 0, 1, 1], [], []>} : vector<256x128xbf16>, vector<128x256xbf16>, vector<256x256xf32> -> vector<256x256xf32>
    %c0_4 = arith.constant 0 : index
    %c0_5 = arith.constant 0 : index
    %6 = vector.load %arg4[%c0_4, %c0_5] : memref<1x256xf32, #tpu.memory_space<vmem>>, vector<1x256xf32>
    %7 = vector.broadcast %6 : vector<1x256xf32> to vector<256x256xf32>
    %8 = arith.addf %5, %7 : vector<256x256xf32>
    %cst_6 = arith.constant 4.471500e-02 : f32
    %9 = vector.broadcast %cst_6 : f32 to vector<256x256xf32>
    %10 = arith.mulf %9, %8 : vector<256x256xf32>
    %11 = arith.mulf %10, %8 : vector<256x256xf32>
    %12 = arith.mulf %11, %8 : vector<256x256xf32>
    %13 = arith.addf %8, %12 : vector<256x256xf32>
    %cst_7 = arith.constant 0.797884583 : f32
    %14 = vector.broadcast %cst_7 : f32 to vector<256x256xf32>
    %15 = arith.mulf %14, %13 : vector<256x256xf32>
    %cst_8 = arith.constant 5.000000e-01 : f32
    %16 = vector.broadcast %cst_8 : f32 to vector<256x256xf32>
    %17 = arith.mulf %16, %8 : vector<256x256xf32>
    %18 = math.tanh %15 : vector<256x256xf32>
    %cst_9 = arith.constant 1.000000e+00 : f32
    %19 = vector.broadcast %cst_9 : f32 to vector<256x256xf32>
    %20 = arith.addf %19, %18 : vector<256x256xf32>
    %21 = arith.mulf %17, %20 : vector<256x256xf32>
    %c0_10 = arith.constant 0 : index
    %c0_11 = arith.constant 0 : index
    %22 = vector.load %arg8[%c0_10, %c0_11] : memref<256x128xf32, #tpu.memory_space<vmem>>, vector<256x128xf32>
    %23 = arith.truncf %21 : vector<256x256xf32> to vector<256x256xbf16>
    %c0_12 = arith.constant 0 : index
    %c0_13 = arith.constant 0 : index
    %24 = vector.load %arg5[%c0_12, %c0_13] : memref<256x128xbf16, #tpu.memory_space<vmem>>, vector<256x128xbf16>
    %cst_14 = arith.constant dense<0.000000e+00> : vector<256x128xf32>
    %25 = tpu.matmul %23, %24, %cst_14 {dimension_numbers = #tpu.dot_dimension_numbers<[1], [0], [0], [1], [0, 0, 1, 1], [], []>} : vector<256x256xbf16>, vector<256x128xbf16>, vector<256x128xf32> -> vector<256x128xf32>
    %26 = arith.addf %22, %25 : vector<256x128xf32>
    %c0_15 = arith.constant 0 : index
    %c0_16 = arith.constant 0 : index
    %27 = vector.load %arg8[%c0_15, %c0_16] : memref<256x128xf32, #tpu.memory_space<vmem>>, vector<256x128xf32>
    tpu.vector_store %arg8[%c0_15, %c0_16], %26 {strides = array<i32>} : memref<256x128xf32, #tpu.memory_space<vmem>>, vector<256x128xf32>,
    %c1_i32 = arith.constant 1 : i32
    %28 = arith.cmpi eq, %arg1, %c1_i32 : i32
    %29 = arith.extui %28 : i1 to i32
    %c0_i32_17 = arith.constant 0 : i32
    %30 = arith.cmpi ne, %29, %c0_i32_17 : i32
    scf.if %30 {
      %c0_18 = arith.constant 0 : index
      %c0_19 = arith.constant 0 : index
      %31 = vector.load %arg8[%c0_18, %c0_19] : memref<256x128xf32, #tpu.memory_space<vmem>>, vector<256x128xf32>
      %c0_20 = arith.constant 0 : index
      %c0_21 = arith.constant 0 : index
      %32 = vector.load %arg7[%c0_20, %c0_21] : memref<256x128xf32, #tpu.memory_space<vmem>>, vector<256x128xf32>
      tpu.vector_store %arg7[%c0_20, %c0_21], %31 {strides = array<i32>} : memref<256x128xf32, #tpu.memory_space<vmem>>, vector<256x128xf32>,
    } else {
    }
    return
  }
  func.func @transform_0(%arg0: i32, %arg1: i32) -> (i32, i32) {
    %c0_i32 = arith.constant 0 : i32
    %c0_i32_0 = arith.constant 0 : i32
    return %arg0, %c0_i32 : i32, i32
  }
  func.func @transform_1(%arg0: i32, %arg1: i32) -> (i32, i32) {
    %c0_i32 = arith.constant 0 : i32
    %c0_i32_0 = arith.constant 0 : i32
    return %c0_i32, %arg1 : i32, i32
  }
  func.func @transform_2(%arg0: i32, %arg1: i32) -> (i32, i32) {
    %c0_i32 = arith.constant 0 : i32
    %c0_i32_0 = arith.constant 0 : i32
    return %c0_i32, %arg1 : i32, i32
  }
  func.func @transform_3(%arg0: i32, %arg1: i32) -> (i32, i32) {
    %c0_i32 = arith.constant 0 : i32
    %c0_i32_0 = arith.constant 0 : i32
    return %arg1, %c0_i32 : i32, i32
  }
  func.func @transform_4(%arg0: i32, %arg1: i32) -> (i32, i32) {
    %c0_i32 = arith.constant 0 : i32
    %c0_i32_0 = arith.constant 0 : i32
    %c0_i32_1 = arith.constant 0 : i32
    return %c0_i32, %c0_i32_0 : i32, i32
  }
  func.func @transform_5(%arg0: i32, %arg1: i32) -> (i32, i32) {
    %c0_i32 = arith.constant 0 : i32
    %c0_i32_0 = arith.constant 0 : i32
    return %arg0, %c0_i32 : i32, i32
  }
}

</mosaic_0001>

<bundles_post_ra>
// kernel: ffn_forward.1
= control target key start
LH: loop header
LB: loop body
LE: loop exit
PB: predicated region body
PF: predicated region fallthrough
CT: control target
= control target key end

     0   :  { %s3623_s0 = inlined_call_operand.vmem [shape: bf16[512,128], index: 0, kind: input, shape index: {}]   ;;  %s3624_s1 = inlined_call_operand.vmem [shape: bf16[128,512], index: 1, kind: input, shape index: {}]   ;;  %s3625_s2 = inlined_call_operand.vmem [shape: f32[1,512], index: 2, kind: input, shape index: {}]   ;;  %s3626_s3 = inlined_call_operand.vmem [shape: bf16[512,128], index: 3, kind: input, shape index: {}]   ;;  %s3627_s4 = inlined_call_operand.vmem [shape: f32[1,128], index: 4, kind: input, shape index: {}]   ;;  %s3628_s5 = inlined_call_operand.hbm [shape: f32[512,128], index: 5, kind: output, shape index: {}]  }
   0x1   :  { %3635 = sst [smem:[#allocation13_spill]] %s3624_s1 }
   0x2   :  { %10 = vsyncpa [#allocation5], 0 }
   0x3   :  { %12 = vsyncpa [#allocation5 + $0x1], 0  ;;  %s2660_s18 = smov 0   ;;  %s2662_s19 = smov 0  }
   0x4   :  { %s2664_s20 = smov 0   ;;  %s2666_s21 = smov 0  }
   0x5   :  { %s2668_s22 = smov 0   ;;  %s2670_s23 = smov 0  }
   0x6   :  { %s2672_s24 = smov 0   ;;  %s2674_s25 = smov 0  }
   0x7   :  { %s2676_s26 = smov 0   ;;  %s2678_s27 = smov 0  }
   0x8 LB: > { %3636 = sst [smem:[#allocation7_spill]] %s2604_s22  ;;  %s2055_s28 = sadd.s32 4294967295, %s2624_s27   ;;  %s2624_s27 = sphi %s2678_s27, %s18_s27   ;;  %s2620_s26 = sphi %s2676_s26, %s3652_s26   ;;  %s2616_s25 = sphi %s2674_s25, %s3651_s25   ;;  %s2612_s24 = sphi %s2672_s24, %s3650_s24   ;;  %s2608_s23 = sphi %s2670_s23, %s3649_s23   ;;  %s2604_s22 = sphi %s2668_s22, %s3648_s22   ;;  %s2600_s21 = sphi %s2666_s21, %s3647_s21   ;;  %s2596_s20 = sphi %s2664_s20, %s3655_s20   ;;  %s2592_s19 = sphi %s2662_s19, %s3654_s19   ;;  %s2588_s18 = sphi %s2660_s18, %s3653_s18  }
   0x9   : > { %3637 = sst [smem:[#allocation8_spill]] %s2616_s25  ;;  %s2056_s29 = sadd.s32 4294967294, %s2624_s27  }
   0xa   : > { %3638 = sst [smem:[#allocation9_spill]] %s2620_s26  ;;  %s27_s30 = sadd.s32 1, %s2616_s25 }
   0xb   : > { %s30_s6 = sadd.s32 1, %s2620_s26  ;;  %p28_p0 = scmp.ge.s32.totalorder %s27_s30, 2 }
   0xc   : > { %s63_s7 = sadd.s32 1, %s2604_s22  ;;  %p70_p1 = scmp.ne.s32.totalorder %s2604_s22, %s2600_s21 }
   0xd   : > { %p71_p2 = scmp.eq.s32.totalorder %s2624_s27, 0  ;;  %s3657_s30 = smov (%p28_p0, %s27_s30), 0 }
   0xe   : > { %3639 = sst [smem:[#allocation10_spill]] %s3657_s30  ;;  %s3659_s6 = smov (!%p28_p0, %s30_s6), %s2620_s26 }
   0xf   : > { %s60_s8 = ssub.s32 %s2616_s25, %s3657_s30  ;;  %p2723_p3 = por %p71_p2, %p70_p1 }
  0x10   : > { %p32_p4 = scmp.ge.s32.totalorder %s3659_s6, 2  ;;  %p61_p5 = scmp.eq.s32.totalorder %s60_s8, 0 }
  0x11   : > { %s162_s10 = sadd.s32 1, %s2596_s20  ;;  %p172_p6 = scmp.ne.s32.totalorder %s2596_s20, %s2592_s19 }
  0x12   : > { %s3661_s6 = smov (%p32_p4, %s3659_s6), 0  ;;  %p173_p7 = scmp.eq.s32.totalorder %s2055_s28, 3 }
  0x13   : > { %3641 = sst [smem:[#allocation11_spill]] %s3661_s6  ;;  %s159_s12 = ssub.s32 %s2620_s26, %s3661_s6 }
  0x14   : > { %s2733_s11 = scalar_select %p61_p5, %s2604_s22, %s63_s7  }
  0x15   : > { %p160_p8 = scmp.eq.s32.totalorder %s159_s12, 0  ;;  %p178_p9 = scmp.ne.s32.totalorder %s2592_s19, %s2588_s18 }
  0x16   : > { %3642 = sst [smem:[#allocation12_spill]] %s2733_s11  ;;  %p2739_p10 = por %p173_p7, %p172_p6 }
  0x17   : > { %p179_p11 = scmp.eq.s32.totalorder %s2056_s29, 3  ;;  %p2058_p13 = scmp.ge.s32.totalorder %s2624_s27, 4 }
  0x18   : > { %s2744_s14 = scalar_select %p160_p8, %s2596_s20, %s162_s10  }
  0x19   : > { %p2746_p12 = por %p179_p11, %p178_p9  ;;  %198 = sbr.rel (%p2058_p13) target bundleno = 50 (0x32), region = 20 }
  0x20   : > { %210 = sbr.rel (!%p2723_p3) target bundleno = 50 (0x32), region = 28  ;;  %s212_s16 = sand.u32 (%p2723_p3), 1, %s2604_s22  }
  0x21   : > { %s2126_s17 = sshll.u32 (%p2723_p3), %s2616_s25, 3  ;;  %s2059_s28 = sshll.u32 (%p2723_p3), %s212_s16, 7 }
  0x22   : > { %s3645_s1 = sld [smem:[#allocation13_spill]] (%p2723_p3)  ;;  %s214_s9 = scalar_lea.vmem (%p2723_p3), [#allocation3], %s2059_s28 }
  0x28   : > { %s2758_s29 = scalar_lea.vmem %s3645_s1, %s2126_s17 }
  0x29   : > { %v275_v0 = vld [vmem:[%s2758_s29] sm:$0xff]  ;;  %v277_v1 = vld [vmem:[%s2758_s29 + $0x10] sm:$0xff] }
  0x2a   : > { %v279_v2 = vld [vmem:[%s2758_s29 + $0x20] sm:$0xff]  ;;  %276 = vst [vmem:[%s214_s9] sm:$0xff] %v275_v0  ;;  %278 = vst [vmem:[%s214_s9 + $0x8] sm:$0xff] %v277_v1  ;;  %v281_v3 = vld [vmem:[%s2758_s29 + $0x30] sm:$0xff] }
  0x2b   : > { %280 = vst [vmem:[%s214_s9 + $0x10] sm:$0xff] %v279_v2  ;;  %v283_v4 = vld [vmem:[%s2758_s29 + $0x40] sm:$0xff]  ;;  %v285_v5 = vld [vmem:[%s2758_s29 + $0x50] sm:$0xff]  ;;  %282 = vst [vmem:[%s214_s9 + $0x18] sm:$0xff] %v281_v3 }
  0x2c   : > { %284 = vst [vmem:[%s214_s9 + $0x20] sm:$0xff] %v283_v4  ;;  %286 = vst [vmem:[%s214_s9 + $0x28] sm:$0xff] %v285_v5  ;;  %v287_v6 = vld [vmem:[%s2758_s29 + $0x60] sm:$0xff]  ;;  %v289_v7 = vld [vmem:[%s2758_s29 + $0x70] sm:$0xff] }
  0x2d   : > { %v291_v8 = vld [vmem:[%s2758_s29 + $0x80] sm:$0xff]  ;;  %288 = vst [vmem:[%s214_s9 + $0x30] sm:$0xff] %v287_v6  ;;  %290 = vst [vmem:[%s214_s9 + $0x38] sm:$0xff] %v289_v7  ;;  %v293_v9 = vld [vmem:[%s2758_s29 + $0x90] sm:$0xff] }
  0x2e   : > { %292 = vst [vmem:[%s214_s9 + $0x40] sm:$0xff] %v291_v8  ;;  %v295_v10 = vld [vmem:[%s2758_s29 + $0xa0] sm:$0xff]  ;;  %v297_v11 = vld [vmem:[%s2758_s29 + $0xb0] sm:$0xff]  ;;  %294 = vst [vmem:[%s214_s9 + $0x48] sm:$0xff] %v293_v9 }
  0x2f   : > { %296 = vst [vmem:[%s214_s9 + $0x50] sm:$0xff] %v295_v10  ;;  %298 = vst [vmem:[%s214_s9 + $0x58] sm:$0xff] %v297_v11  ;;  %v299_v12 = vld [vmem:[%s2758_s29 + $0xc0] sm:$0xff]  ;;  %v301_v13 = vld [vmem:[%s2758_s29 + $0xd0] sm:$0xff] }
  0x30   : > { %v303_v14 = vld [vmem:[%s2758_s29 + $0xe0] sm:$0xff]  ;;  %300 = vst [vmem:[%s214_s9 + $0x60] sm:$0xff] %v299_v12  ;;  %302 = vst [vmem:[%s214_s9 + $0x68] sm:$0xff] %v301_v13  ;;  %v305_v15 = vld [vmem:[%s2758_s29 + $0xf0] sm:$0xff] }
  0x31   : > { %304 = vst [vmem:[%s214_s9 + $0x70] sm:$0xff] %v303_v14  ;;  %306 = vst [vmem:[%s214_s9 + $0x78] sm:$0xff] %v305_v15 }
  0x32 PF: > { %p2062_p0 = scmp.ge.s32.totalorder %s2624_s27, 1  ;;  %p328_p1 = scmp.lt.s32.totalorder %s2624_s27, 5 }
  0x34   : > { %p329_p2 = pnand %p2062_p0, %p328_p1 }
  0x35   : > { %s335_s10 = sand.u32 (!%p329_p2), 1, %s2600_s21   ;;  %s3630_s12 = sand.u32 (!%p329_p2), 1, %s2592_s19  }
  0x36   : > { %332 = sbr.rel (%p329_p2) target bundleno = 768 (0x300), region = 74  ;;  %s2063_s16 = sshll.u32 (!%p329_p2), %s335_s10, 7 }
  0x37   : > { %s2064_s17 = sshll.u32 (!%p329_p2), %s3630_s12, 8  ;;  %s2065_s28 = sshll.u32 (!%p329_p2), %s2612_s24, 5 }
  0x38   : > { %s2067_s7 = sshll.u32 (!%p329_p2), %s2608_s23, 1  ;;  %p377_p3 = scmp.lt.s32.totalorder (!%p329_p2), %s2065_s28, 63 }
  0x39   : > { %p384_p4 = scmp.lt.s32.totalorder (!%p329_p2), %s2067_s7, 3  ;;  %s2068_s8 = sshll.u32 (!%p329_p2), %s2608_s23, 5 }
  0x3a   : > { %p389_p5 = scmp.lt.s32.totalorder (!%p329_p2), %s2068_s8, 63  ;;  %s2801_s22 = scalar_lea.vmem (!%p329_p2), [#allocation3], %s2063_s16 }
  0x3b   : > { %p2070_p6 = scmp.ne.s32.totalorder (!%p329_p2), %s2608_s23, 0 }
  0x3d   : > { %s3663_s28 = smov (!%p377_p3, %s2065_s28), 63  ;;  %s3665_s7 = smov (!%p384_p4, %s2067_s7), 3 }
  0x3e   : > { %s2066_s29 = sshll.u32 %s3663_s28, 2  ;;  %s386_s12 = scalar_lea.vmem %s3625_s2, %s3665_s7  ;;  %v2071_v16 = vld [vmem:[%s3627_s4] ss:$0 sm:$0xff] (!%p2070_p6) }
  0x3f   : > { %s2790_s6 = scalar_lea.vmem %s3623_s0, %s2066_s29  ;;  %s3667_s8 = smov (!%p389_p5, %s2068_s8), 63  ;;  %407 = vst [vmem:[#allocation2] sm:$0xff] (!%p2070_p6), %v2071_v16  ;;  %408 = vst [vmem:[#allocation2 + $0x8] sm:$0xff] (!%p2070_p6), %v2071_v16 }
  0x40   : > { %s2069_s30 = sshll.u32 %s3667_s8, 2  ;;  %s2803_s28 = scalar_lea.vmem [#allocation4], %s2064_s17  ;;  %409 = vst [vmem:[#allocation2 + $0x10] sm:$0xff] (!%p2070_p6), %v2071_v16  ;;  %410 = vst [vmem:[#allocation2 + $0x18] sm:$0xff] (!%p2070_p6), %v2071_v16 }
  0x41   : > { %s2799_s11 = scalar_lea.vmem %s3626_s3, %s2069_s30  ;;  %399 = sbr.rel (%p2070_p6) target bundleno = 79 (0x4f), region = 82  ;;  %411 = vst [vmem:[#allocation2 + $0x20] sm:$0xff] (!%p2070_p6), %v2071_v16  ;;  %412 = vst [vmem:[#allocation2 + $0x28] sm:$0xff] (!%p2070_p6), %v2071_v16 }
  0x42   : > { %413 = vst [vmem:[#allocation2 + $0x30] sm:$0xff] (!%p2070_p6), %v2071_v16  ;;  %414 = vst [vmem:[#allocation2 + $0x38] sm:$0xff] (!%p2070_p6), %v2071_v16 }
  0x43   : > { %415 = vst [vmem:[#allocation2 + $0x40] sm:$0xff] (!%p2070_p6), %v2071_v16  ;;  %416 = vst [vmem:[#allocation2 + $0x48] sm:$0xff] (!%p2070_p6), %v2071_v16 }
  0x44   : > { %417 = vst [vmem:[#allocation2 + $0x50] sm:$0xff] (!%p2070_p6), %v2071_v16  ;;  %418 = vst [vmem:[#allocation2 + $0x58] sm:$0xff] (!%p2070_p6), %v2071_v16 }
  0x45   : > { %419 = vst [vmem:[#allocation2 + $0x60] sm:$0xff] (!%p2070_p6), %v2071_v16  ;;  %420 = vst [vmem:[#allocation2 + $0x68] sm:$0xff] (!%p2070_p6), %v2071_v16 }
  0x46   : > { %421 = vst [vmem:[#allocation2 + $0x70] sm:$0xff] (!%p2070_p6), %v2071_v16  ;;  %422 = vst [vmem:[#allocation2 + $0x78] sm:$0xff] (!%p2070_p6), %v2071_v16 }
  0x47   : > { %423 = vst [vmem:[#allocation2 + $0x80] sm:$0xff] (!%p2070_p6), %v2071_v16  ;;  %424 = vst [vmem:[#allocation2 + $0x88] sm:$0xff] (!%p2070_p6), %v2071_v16 }
  0x48   : > { %425 = vst [vmem:[#allocation2 + $0x90] sm:$0xff] %v2071_v16  ;;  %426 = vst [vmem:[#allocation2 + $0x98] sm:$0xff] %v2071_v16 }
  0x49   : > { %427 = vst [vmem:[#allocation2 + $0xa0] sm:$0xff] %v2071_v16  ;;  %428 = vst [vmem:[#allocation2 + $0xa8] sm:$0xff] %v2071_v16 }
  0x4a   : > { %429 = vst [vmem:[#allocation2 + $0xb0] sm:$0xff] %v2071_v16  ;;  %430 = vst [vmem:[#allocation2 + $0xb8] sm:$0xff] %v2071_v16 }
  0x4b   : > { %431 = vst [vmem:[#allocation2 + $0xc0] sm:$0xff] %v2071_v16  ;;  %432 = vst [vmem:[#allocation2 + $0xc8] sm:$0xff] %v2071_v16 }
  0x4c   : > { %433 = vst [vmem:[#allocation2 + $0xd0] sm:$0xff] %v2071_v16  ;;  %434 = vst [vmem:[#allocation2 + $0xd8] sm:$0xff] %v2071_v16 }
  0x4d   : > { %435 = vst [vmem:[#allocation2 + $0xe0] sm:$0xff] %v2071_v16  ;;  %436 = vst [vmem:[#allocation2 + $0xe8] sm:$0xff] %v2071_v16 }
  0x4e   : > { %437 = vst [vmem:[#allocation2 + $0xf0] sm:$0xff] %v2071_v16  ;;  %438 = vst [vmem:[#allocation2 + $0xf8] sm:$0xff] %v2071_v16 }
  0x4f PF: > { %v2330_v17 = vld [vmem:[%s2801_s22 + $0x4] ss:$8 sps:$4 sm:$0xff]   ;;  %v2332_v18 = vld [vmem:[%s2801_s22] ss:$8 sps:$4 sm:$0xff]   ;;  %v2626_v19 = vmov 0   ;;  %v2356_v36 = vld [vmem:[%s2790_s6 + $0x10] sm:$0xff]   ;;  %v489_v2 = vlaneseq }
  0x50   : > { %707 = vmatprep.mubr.bf16.mxu0 %v2626_v19  ;;  %675 = vmatprep.subr.bf16.mxu0 %v2330_v17  ;;  %v2333_v20 = vld [vmem:[%s2801_s22 + $0x14] ss:$8 sps:$4 sm:$0xff]   ;;  %v2335_v21 = vld [vmem:[%s2801_s22 + $0x10] ss:$8 sps:$4 sm:$0xff]   ;;  %v2336_v22 = vld [vmem:[%s2801_s22 + $0x24] ss:$8 sps:$4 sm:$0xff]  }
  0x51   : > { %676 = vmatpush1.bf16.msra.mxu0 %v2332_v18  ;;  %v2338_v23 = vld [vmem:[%s2801_s22 + $0x20] ss:$8 sps:$4 sm:$0xff]   ;;  %v2339_v24 = vld [vmem:[%s2801_s22 + $0x34] ss:$8 sps:$4 sm:$0xff]   ;;  %v2341_v25 = vld [vmem:[%s2801_s22 + $0x30] ss:$8 sps:$4 sm:$0xff]  }
  0x52   : > { %677 = vmatprep.subr.bf16.mxu0 %v2333_v20  ;;  %v2342_v26 = vld [vmem:[%s2801_s22 + $0x44] ss:$8 sps:$4 sm:$0xff]   ;;  %v2344_v27 = vld [vmem:[%s2801_s22 + $0x40] ss:$8 sps:$4 sm:$0xff]   ;;  %v2345_v28 = vld [vmem:[%s2801_s22 + $0x54] ss:$8 sps:$4 sm:$0xff]  }
  0x53   : > { %v2347_v29 = vld [vmem:[%s2801_s22 + $0x50] ss:$8 sps:$4 sm:$0xff]   ;;  %v2348_v30 = vld [vmem:[%s2801_s22 + $0x64] ss:$8 sps:$4 sm:$0xff]   ;;  %v2350_v31 = vld [vmem:[%s2801_s22 + $0x60] ss:$8 sps:$4 sm:$0xff]  }
  0x54   : > { %v2351_v32 = vld [vmem:[%s2801_s22 + $0x74] ss:$8 sps:$4 sm:$0xff]   ;;  %v2353_v33 = vld [vmem:[%s2801_s22 + $0x70] ss:$8 sps:$4 sm:$0xff]   ;;  %v2354_v34 = vld [vmem:[%s2790_s6] sm:$0xff]   ;;  %v490_v3 = vshrl.u32 %v489_v2, 7 }
  0x55   : > { %678 = vmatpush1.bf16.msra.mxu0 %v2335_v21  ;;  %v2355_v35 = vld [vmem:[%s2790_s6 + $0x8] sm:$0xff]   ;;  %v2357_v37 = vld [vmem:[%s2790_s6 + $0x18] sm:$0xff]   ;;  %v2358_v38 = vld [vmem:[%s2790_s6 + $0x20] sm:$0xff]   ;;  %p2120_p7 = scmp.ne.s32.totalorder %s2608_s23, 1 }
  0x56   : > { %679 = vmatprep.subr.bf16.mxu0 %v2336_v22  ;;  %v2359_v39 = vld [vmem:[%s2790_s6 + $0x28] sm:$0xff]   ;;  %v2360_v40 = vld [vmem:[%s2790_s6 + $0x30] sm:$0xff]   ;;  %v2361_v41 = vld [vmem:[%s2790_s6 + $0x38] sm:$0xff]   ;;  %v491_v4 = vsub.s32 0, %v490_v3  ;;  %v495_v6 = vsub.s32 1, %v490_v3 }
  0x57   : > { %v2362_v42 = vld [vmem:[%s2790_s6 + $0x40] sm:$0xff]   ;;  %v2363_v43 = vld [vmem:[%s2790_s6 + $0x48] sm:$0xff]   ;;  %v2364_v44 = vld [vmem:[%s2790_s6 + $0x50] sm:$0xff]  }
  0x58   : > { %v2370_v45 = vld [vmem:[%s2799_s11 + $0x40] sm:$0xff]   ;;  %v2365_v46 = vld [vmem:[%s2790_s6 + $0x58] sm:$0xff]   ;;  %v2372_v48 = vld [vmem:[%s2799_s11 + $0x48] sm:$0xff]  }
  0x59   : > { %680 = vmatpush1.bf16.msra.mxu0 %v2338_v23  ;;  %v2371_v47 = vld [vmem:[%s2799_s11] sm:$0xff]   ;;  %2128 = vmatprep.subr.bf16.mxu1 %v2370_v45  ;;  %v2373_v49 = vld [vmem:[%s2799_s11 + $0x8] sm:$0xff]   ;;  %v2374_v50 = vld [vmem:[%s2799_s11 + $0x50] sm:$0xff]  }
  0x5a   : > { %681 = vmatprep.subr.bf16.mxu0 %v2339_v24  ;;  %2129 = vmatpush3.bf16.msra.mxu1 %v2371_v47  ;;  %v2366_v51 = vld [vmem:[%s2790_s6 + $0x60] sm:$0xff]   ;;  %v2375_v52 = vld [vmem:[%s2799_s11 + $0x10] sm:$0xff]   ;;  %v2376_v53 = vld [vmem:[%s2799_s11 + $0x58] sm:$0xff]  }
  0x5b   : > { %2130 = vmatprep.subr.bf16.mxu1 %v2372_v48  ;;  %v2377_v54 = vld [vmem:[%s2799_s11 + $0x18] sm:$0xff]   ;;  %v2378_v55 = vld [vmem:[%s2799_s11 + $0x60] sm:$0xff]   ;;  %v2367_v56 = vld [vmem:[%s2790_s6 + $0x68] sm:$0xff]  }
  0x5c   : > { %v2379_v57 = vld [vmem:[%s2799_s11 + $0x20] sm:$0xff]   ;;  %v2380_v58 = vld [vmem:[%s2799_s11 + $0x68] sm:$0xff]   ;;  %v2382_v60 = vld [vmem:[%s2799_s11 + $0x70] sm:$0xff]  }
  0x5d   : > { %682 = vmatpush1.bf16.msra.mxu0 %v2341_v25  ;;  %v2381_v59 = vld [vmem:[%s2799_s11 + $0x28] sm:$0xff]   ;;  %v2368_v61 = vld [vmem:[%s2790_s6 + $0x70] sm:$0xff]   ;;  %v2384_v63 = vld [vmem:[%s2799_s11 + $0x78] sm:$0xff]  }
  0x5e   : > { %683 = vmatprep.subr.bf16.mxu0 %v2342_v26  ;;  %2131 = vmatpush3.bf16.msra.mxu1 %v2373_v49  ;;  %v2383_v62 = vld [vmem:[%s2799_s11 + $0x30] sm:$0xff]   ;;  %v2385_v0 = vld [vmem:[%s2799_s11 + $0x38] sm:$0xff]   ;;  %v487_v5 = vld [vmem:[%s386_s12] sm:$0x3] }
  0x5f   : > { %2132 = vmatprep.subr.bf16.mxu1 %v2374_v50  ;;  %v2369_v1 = vld [vmem:[%s2790_s6 + $0x78] sm:$0xff]   ;;  %v2878_v7 = vrot.slane %v487_v5, %v491_v4  ;;  %v2880_v8 = vrot.slane %v487_v5, %v495_v6 }
  0x61   : > { %684 = vmatpush1.bf16.msra.mxu0 %v2344_v27 }
  0x62   : > { %685 = vmatprep.subr.bf16.mxu0 %v2345_v28  ;;  %2133 = vmatpush3.bf16.msra.mxu1 %v2375_v52 }
  0x63   : > { %2134 = vmatprep.subr.bf16.mxu1 %v2376_v53 }
  0x65   : > { %686 = vmatpush1.bf16.msra.mxu0 %v2347_v29 }
  0x66   : > { %687 = vmatprep.subr.bf16.mxu0 %v2348_v30  ;;  %2135 = vmatpush3.bf16.msra.mxu1 %v2377_v54 }
  0x67   : > { %2136 = vmatprep.subr.bf16.mxu1 %v2378_v55 }
  0x69   : > { %688 = vmatpush1.bf16.msra.mxu0 %v2350_v31 }
  0x6a   : > { %689 = vmatprep.subr.bf16.mxu0 %v2351_v32  ;;  %2137 = vmatpush3.bf16.msra.mxu1 %v2379_v57 }
  0x6b   : > { %2138 = vmatprep.subr.bf16.mxu1 %v2380_v58 }
  0x6d   : > { %690 = vmatpush1.bf16.msra.mxu0 %v2353_v33 }
  0x6e   : > { %2139 = vmatpush3.bf16.msra.mxu1 %v2381_v59 }
  0x6f   : > { %2140 = vmatprep.subr.bf16.mxu1 %v2382_v60 }
  0x70   : > { %708 = vmatmul.mubr.bf16.vlgmr.msra.gmra.mrb[0].mxu0 %v2354_v34 }
  0x71   : > { %717 = vmatprep.mubr.bf16.mxu0 %v2626_v19 }
  0x72   : > { %2141 = vmatpush3.bf16.msra.mxu1 %v2383_v62 }
  0x73   : > { %2142 = vmatprep.subr.bf16.mxu1 %v2384_v63 }
  0x76   : > { %2143 = vmatpush3.bf16.msra.mxu1 %v2385_v0 }
  0x78   : > { %718 = vmatmul.mubr.bf16.gmra.mrb[4].mxu0 %v2355_v35 }
  0x79   : > { %727 = vmatprep.mubr.bf16.mxu0 %v2626_v19 }
  0x80   : > { %728 = vmatmul.mubr.bf16.gmra.mrb[8].mxu0 %v2356_v36 }
  0x81   : > { %737 = vmatprep.mubr.bf16.mxu0 %v2626_v19 }
  0x88   : > { %738 = vmatmul.mubr.bf16.gmra.mrb[12].mxu0 %v2357_v37 }
  0x89   : > { %747 = vmatprep.mubr.bf16.mxu0 %v2626_v19 }
  0x90   : > { %748 = vmatmul.mubr.bf16.gmra.mrb[16].mxu0 %v2358_v38 }
  0x91   : > { %757 = vmatprep.mubr.bf16.mxu0 %v2626_v19 }
  0x98   : > { %758 = vmatmul.mubr.bf16.gmra.mrb[20].mxu0 %v2359_v39 }
  0x99   : > { %767 = vmatprep.mubr.bf16.mxu0 %v2626_v19 }
  0xa0   : > { %768 = vmatmul.mubr.bf16.gmra.mrb[24].mxu0 %v2360_v40 }
  0xa1   : > { %777 = vmatprep.mubr.bf16.mxu0 %v2626_v19 }
  0xa8   : > { %778 = vmatmul.mubr.bf16.gmra.mrb[28].mxu0 %v2361_v41 }
  0xa9   : > { %787 = vmatprep.mubr.bf16.mxu0 %v2626_v19 }
  0xb0   : > { %788 = vmatmul.mubr.bf16.gmra.mrb[32].mxu0 %v2362_v42 }
  0xb1   : > { %797 = vmatprep.mubr.bf16.mxu0 %v2626_v19 }
  0xb8   : > { %798 = vmatmul.mubr.bf16.gmra.mrb[36].mxu0 %v2363_v43 }
  0xb9   : > { %807 = vmatprep.mubr.bf16.mxu0 %v2626_v19 }
  0xc0   : > { %808 = vmatmul.mubr.bf16.gmra.mrb[40].mxu0 %v2364_v44 }
  0xc1   : > { %817 = vmatprep.mubr.bf16.mxu0 %v2626_v19 }
  0xc8   : > { %818 = vmatmul.mubr.bf16.gmra.mrb[44].mxu0 %v2365_v46 }
  0xc9   : > { %827 = vmatprep.mubr.bf16.mxu0 %v2626_v19 }
  0xd0   : > { %828 = vmatmul.mubr.bf16.gmra.mrb[48].mxu0 %v2366_v51 }
  0xd1   : > { %837 = vmatprep.mubr.bf16.mxu0 %v2626_v19 }
  0xd8   : > { %838 = vmatmul.mubr.bf16.gmra.mrb[52].mxu0 %v2367_v56 }
  0xd9   : > { %847 = vmatprep.mubr.bf16.mxu0 %v2626_v19 }
  0xe0   : > { %848 = vmatmul.mubr.bf16.gmra.mrb[56].mxu0 %v2368_v61 }
  0xe1   : > { %857 = vmatprep.mubr.bf16.mxu0 %v2626_v19 }
  0xe8   : > { %858 = vmatmul.mubr.bf16.gmra.mrb[60].mxu0 %v2369_v1 }
 0x143   : > { %v709_v9 = vpop.f32.mrb[0].mxu0 }
 0x144   : > { %v710_v10 = vadd.f32 %v709_v9, %v2878_v7  ;;  %v711_v11 = vpop.f32.mrb[1].mxu0 }
 0x145   : > { %v712_v12 = vadd.f32 %v711_v11, %v2880_v8  ;;  %v713_v13 = vpop.f32.mrb[2].mxu0 }
 0x146   : > { %v868_v14 = vmul.f32 0.044715, %v710_v10  ;;  %v714_v15 = vadd.f32 %v713_v13, %v2878_v7  ;;  %v715_v16 = vpop.f32.mrb[3].mxu0  ;;  %v1188_v59 = vmul.f32 0.5, %v710_v10 }
 0x147   : > { %v869_v17 = vmul.f32 0.044715, %v712_v12  ;;  %v2886_v18 = vadd.f32 %v715_v16, %v2880_v8  ;;  %v1189_v0 = vmul.f32 0.5, %v712_v12 }
 0x148   : > { %v932_v19 = vmul.f32 %v868_v14, %v710_v10  ;;  %v870_v20 = vmul.f32 0.044715, %v714_v15  ;;  %v1190_v4 = vmul.f32 0.5, %v714_v15 }
 0x149   : > { %v871_v21 = vmul.f32 0.044715, %v2886_v18  ;;  %v933_v22 = vmul.f32 %v869_v17, %v712_v12 }
 0x14a   : > { %v996_v23 = vmul.f32 %v932_v19, %v710_v10  ;;  %v934_v24 = vmul.f32 %v870_v20, %v714_v15 }
 0x14b   : > { %v719_v25 = vpop.f32.mrb[4].mxu0  ;;  %v935_v26 = vmul.f32 %v871_v21, %v2886_v18  ;;  %v997_v27 = vmul.f32 %v933_v22, %v712_v12  ;;  %v1191_v21 = vmul.f32 0.5, %v2886_v18 }
 0x14c   : > { %v998_v28 = vmul.f32 %v934_v24, %v714_v15  ;;  %v2891_v29 = vadd.f32 %v719_v25, %v2878_v7  ;;  %v721_v30 = vpop.f32.mrb[5].mxu0  ;;  %v1060_v31 = vadd.f32 %v996_v23, %v710_v10 }
 0x14d   : > { %v722_v32 = vadd.f32 %v721_v30, %v2880_v8  ;;  %v723_v33 = vpop.f32.mrb[6].mxu0  ;;  %v999_v34 = vmul.f32 %v935_v26, %v2886_v18  ;;  %v1061_v35 = vadd.f32 %v997_v27, %v712_v12 }
 0x14e   : > { %v872_v36 = vmul.f32 0.044715, %v2891_v29  ;;  %v2897_v37 = vadd.f32 %v723_v33, %v2878_v7  ;;  %v725_v38 = vpop.f32.mrb[7].mxu0  ;;  %v1062_v39 = vadd.f32 %v998_v28, %v714_v15  ;;  %v1124_v40 = vmul.f32 0.7978846, %v1060_v31 }
 0x14f   : > { %v873_v41 = vmul.f32 0.044715, %v722_v32  ;;  %v726_v42 = vadd.f32 %v725_v38, %v2880_v8  ;;  %v1063_v43 = vadd.f32 %v999_v34, %v2886_v18  ;;  %v1125_v44 = vmul.f32 0.7978846, %v1061_v35 }
 0x150   : > { %v936_v45 = vmul.f32 %v872_v36, %v2891_v29  ;;  %v874_v46 = vmul.f32 0.044715, %v2897_v37  ;;  %v1126_v47 = vmul.f32 0.7978846, %v1062_v39  ;;  %2386 = vtanh.f32 %v1124_v40 }
 0x151   : > { %v937_v48 = vmul.f32 %v873_v41, %v722_v32  ;;  %v875_v49 = vmul.f32 0.044715, %v726_v42  ;;  %v1127_v50 = vmul.f32 0.7978846, %v1063_v43  ;;  %2388 = vtanh.f32 %v1125_v44 }
 0x152   : > { %v1000_v51 = vmul.f32 %v936_v45, %v2891_v29  ;;  %v938_v52 = vmul.f32 %v874_v46, %v2897_v37  ;;  %2390 = vtanh.f32 %v1126_v47  ;;  %v2926_v22 = vmul.f32 0.5, %v722_v32 }
 0x153   : > { %v1001_v53 = vmul.f32 %v937_v48, %v722_v32  ;;  %v939_v54 = vmul.f32 %v875_v49, %v726_v42  ;;  %v729_v55 = vpop.f32.mrb[8].mxu0  ;;  %2392 = vtanh.f32 %v1127_v50  ;;  %v2928_v23 = vmul.f32 0.5, %v726_v42 }
 0x154   : > { %v1002_v56 = vmul.f32 %v938_v52, %v2897_v37  ;;  %v2907_v57 = vadd.f32 %v729_v55, %v2878_v7  ;;  %v731_v58 = vpop.f32.mrb[9].mxu0  ;;  %v1064_v60 = vadd.f32 %v1000_v51, %v2891_v29  ;;  %v1192_v34 = vmul.f32 0.5, %v2891_v29 }
 0x155   : > { %v1003_v61 = vmul.f32 %v939_v54, %v726_v42  ;;  %v2911_v62 = vadd.f32 %v731_v58, %v2880_v8  ;;  %v733_v63 = vpop.f32.mrb[10].mxu0  ;;  %v1065_v1 = vadd.f32 %v1001_v53, %v722_v32 }
 0x156   : > { %v2914_v2 = vadd.f32 %v733_v63, %v2878_v7  ;;  %v735_v3 = vpop.f32.mrb[11].mxu0  ;;  %v1066_v5 = vadd.f32 %v1002_v56, %v2897_v37  ;;  %v1128_v6 = vmul.f32 0.7978846, %v1064_v60  ;;  %v876_v14 = vmul.f32 0.044715, %v2907_v57 }
 0x157   : > { %v877_v9 = vmul.f32 0.044715, %v2911_v62  ;;  %v2919_v10 = vadd.f32 %v735_v3, %v2880_v8  ;;  %v1067_v11 = vadd.f32 %v1003_v61, %v726_v42  ;;  %v1129_v13 = vmul.f32 0.7978846, %v1065_v1 }
 0x158   : > { %v878_v12 = vmul.f32 0.044715, %v2914_v2  ;;  %v1130_v16 = vmul.f32 0.7978846, %v1066_v5  ;;  %2394 = vtanh.f32 %v1128_v6  ;;  %v940_v31 = vmul.f32 %v876_v14, %v2907_v57 }
 0x159   : > { %v941_v17 = vmul.f32 %v877_v9, %v2911_v62  ;;  %v879_v15 = vmul.f32 0.044715, %v2919_v10  ;;  %v1131_v19 = vmul.f32 0.7978846, %v1067_v11  ;;  %2396 = vtanh.f32 %v1129_v13 }
 0x15a   : > { %v2387_v20 = vpop.eup %2386  ;;  %2398 = vtanh.f32 %v1130_v16  ;;  %v942_v36 = vmul.f32 %v878_v12, %v2914_v2  ;;  %v1004_v60 = vmul.f32 %v940_v31, %v2907_v57  ;;  %v1194_v63 = vmul.f32 0.5, %v2897_v37 }
 0x15b   : > { %v2389_v24 = vpop.eup %2388  ;;  %v1005_v25 = vmul.f32 %v941_v17, %v2911_v62  ;;  %v943_v26 = vmul.f32 %v879_v15, %v2919_v10  ;;  %v739_v27 = vpop.f32.mrb[12].mxu0  ;;  %v1316_v28 = vadd.f32 1.0, %v2387_v20  ;;  %2400 = vtanh.f32 %v1131_v19 }
 0x15c   : > { %v2391_v30 = vpop.eup %2390  ;;  %v2934_v33 = vadd.f32 %v739_v27, %v2878_v7  ;;  %v741_v18 = vpop.f32.mrb[13].mxu0  ;;  %v1317_v32 = vadd.f32 1.0, %v2389_v24 }
 0x15d   : > { %v2393_v35 = vpop.eup %2392  ;;  %v1007_v38 = vmul.f32 %v943_v26, %v2919_v10  ;;  %v2940_v39 = vadd.f32 %v741_v18, %v2880_v8  ;;  %v743_v40 = vpop.f32.mrb[14].mxu0  ;;  %v1318_v41 = vadd.f32 1.0, %v2391_v30  ;;  %v1380_v46 = vmul.f32 %v1316_v28, %v1188_v59 }
 0x15e   : > { %v880_v42 = vmul.f32 0.044715, %v2934_v33  ;;  %v2944_v43 = vadd.f32 %v743_v40, %v2878_v7  ;;  %v745_v44 = vpop.f32.mrb[15].mxu0  ;;  %v1319_v45 = vadd.f32 1.0, %v2393_v35  ;;  %v1069_v49 = vadd.f32 %v1005_v25, %v2911_v62 }
 0x15f   : > { %v881_v29 = vmul.f32 0.044715, %v2940_v39  ;;  %v2948_v47 = vadd.f32 %v745_v44, %v2880_v8  ;;  %v1382_v48 = vmul.f32 %v1318_v41, %v1190_v4  ;;  %v1381_v51 = vmul.f32 %v1317_v32, %v1189_v0 }
 0x160   : > { %v882_v50 = vmul.f32 0.044715, %v2944_v43  ;;  %v1383_v52 = vmul.f32 %v1319_v45, %v1191_v21  ;;  %v1071_v53 = vadd.f32 %v1007_v38, %v2919_v10  ;;  %v1133_v58 = vmul.f32 0.7978846, %v1069_v49 }
 0x161   : > { %v945_v54 = vmul.f32 %v881_v29, %v2940_v39  ;;  %v883_v55 = vmul.f32 0.044715, %v2948_v47  ;;  %v1476_v56 = vpack.c.bf16 %v1382_v48, %v1380_v46  ;;  %v1006_v4 = vmul.f32 %v942_v36, %v2914_v2 }
 0x162   : > { %v2395_v59 = vpop.eup %2394  ;;  %v1477_v61 = vpack.c.bf16 %v1383_v52, %v1381_v51  ;;  %v1135_v1 = vmul.f32 0.7978846, %v1071_v53  ;;  %v944_v0 = vmul.f32 %v880_v42, %v2934_v33  ;;  %2402 = vtanh.f32 %v1133_v58 }
 0x163   : > { %v2397_v3 = vpop.eup %2396  ;;  %v749_v5 = vpop.f32.mrb[16].mxu0  ;;  %v1320_v6 = vadd.f32 1.0, %v2395_v59  ;;  %v946_v11 = vmul.f32 %v882_v50, %v2944_v43  ;;  %v1009_v16 = vmul.f32 %v945_v54, %v2940_v39  ;;  %v947_v17 = vmul.f32 %v883_v55, %v2948_v47 }
 0x164   : > { %v2399_v9 = vpop.eup %2398  ;;  %v2961_v13 = vadd.f32 %v749_v5, %v2878_v7  ;;  %v751_v14 = vpop.f32.mrb[17].mxu0  ;;  %1668 = vmatprep.mubr.bf16.mxu1 %v1477_v61  ;;  %v1321_v12 = vadd.f32 1.0, %v2397_v3  ;;  %2404 = vtanh.f32 %v1135_v1  ;;  %v1068_v18 = vadd.f32 %v1004_v60, %v2907_v57 }
 0x165   : > { %v2401_v37 = vpop.eup %2400  ;;  %v2966_v15 = vadd.f32 %v751_v14, %v2880_v8  ;;  %v753_v19 = vpop.f32.mrb[18].mxu0  ;;  %1669 = vmatmul.mubr.bf16.vlgmr.msra.gmra.mrb[0].mxu1 %v1476_v56  ;;  %v1322_v20 = vadd.f32 1.0, %v2399_v9  ;;  %v1384_v27 = vmul.f32 %v1320_v6, %v1192_v34  ;;  %v1070_v38 = vadd.f32 %v1006_v4, %v2914_v2 }
 0x166   : > { %v884_v21 = vmul.f32 0.044715, %v2961_v13  ;;  %v2970_v24 = vadd.f32 %v753_v19, %v2878_v7  ;;  %v755_v25 = vpop.f32.mrb[19].mxu0  ;;  %v1323_v26 = vadd.f32 1.0, %v2401_v37  ;;  %v1385_v35 = vmul.f32 %v1321_v12, %v2926_v22 }
 0x167   : > { %v885_v28 = vmul.f32 0.044715, %v2966_v15  ;;  %v2974_v30 = vadd.f32 %v755_v25, %v2880_v8  ;;  %v1386_v31 = vmul.f32 %v1322_v20, %v1194_v63  ;;  %v1011_v40 = vmul.f32 %v947_v17, %v2948_v47 }
 0x168   : > { %v886_v32 = vmul.f32 0.044715, %v2970_v24  ;;  %v1387_v36 = vmul.f32 %v1323_v26, %v2928_v23  ;;  %v1132_v42 = vmul.f32 0.7978846, %v1068_v18  ;;  %v1197_v45 = vmul.f32 0.5, %v2911_v62 }
 0x169   : > { %v887_v34 = vmul.f32 0.044715, %v2974_v30  ;;  %v1478_v41 = vpack.c.bf16 %v1386_v31, %v1384_v27  ;;  %v1199_v46 = vmul.f32 0.5, %v2919_v10  ;;  %v1134_v29 = vmul.f32 0.7978846, %v1070_v38 }
 0x16a   : > { %v1479_v44 = vpack.c.bf16 %v1387_v36, %v1385_v35  ;;  %v1008_v48 = vmul.f32 %v944_v0, %v2934_v33  ;;  %v1010_v22 = vmul.f32 %v946_v11, %v2944_v43  ;;  %v948_v23 = vmul.f32 %v884_v21, %v2961_v13 }
 0x16b   : > { %v949_v49 = vmul.f32 %v885_v28, %v2966_v15  ;;  %v759_v50 = vpop.f32.mrb[20].mxu0  ;;  %v950_v51 = vmul.f32 %v886_v32, %v2970_v24  ;;  %2406 = vtanh.f32 %v1132_v42  ;;  %v1073_v62 = vadd.f32 %v1009_v16, %v2940_v39 }
 0x16c   : > { %v2991_v52 = vadd.f32 %v759_v50, %v2878_v7  ;;  %v761_v53 = vpop.f32.mrb[21].mxu0  ;;  %1676 = vmatprep.mubr.bf16.mxu1 %v1479_v44  ;;  %v2403_v10 = vpop.eup %2402  ;;  %v951_v54 = vmul.f32 %v887_v34, %v2974_v30  ;;  %2408 = vtanh.f32 %v1134_v29  ;;  %v1075_v58 = vadd.f32 %v1011_v40, %v2948_v47 }
 0x16d   : > { %v2996_v55 = vadd.f32 %v761_v53, %v2880_v8  ;;  %v763_v56 = vpop.f32.mrb[22].mxu0  ;;  %1677 = vmatmul.mubr.bf16.gmra.mrb[4].mxu1 %v1478_v41  ;;  %v1325_v1 = vadd.f32 1.0, %v2403_v10  ;;  %v1137_v3 = vmul.f32 0.7978846, %v1073_v62  ;;  %v3004_v4 = vmul.f32 %v948_v23, %v2961_v13 }
 0x16e   : > { %v2405_v59 = vpop.eup %2404  ;;  %v888_v60 = vmul.f32 0.044715, %v2991_v52  ;;  %v3001_v61 = vadd.f32 %v763_v56, %v2878_v7  ;;  %v765_v63 = vpop.f32.mrb[23].mxu0  ;;  %v1139_v6 = vmul.f32 0.7978846, %v1075_v58  ;;  %v1013_v9 = vmul.f32 %v949_v49, %v2966_v15 }
 0x16f   : > { %v3007_v0 = vadd.f32 %v765_v63, %v2880_v8  ;;  %v1327_v5 = vadd.f32 1.0, %v2405_v59  ;;  %v889_v11 = vmul.f32 0.044715, %v2996_v55  ;;  %v1196_v14 = vmul.f32 0.5, %v2907_v57 }
 0x170   : > { %v1198_v12 = vmul.f32 0.5, %v2914_v2  ;;  %v952_v37 = vmul.f32 %v888_v60, %v2991_v52  ;;  %v890_v16 = vmul.f32 0.044715, %v3001_v61  ;;  %v1389_v17 = vmul.f32 %v1325_v1, %v1197_v45 }
 0x171   : > { %v1391_v19 = vmul.f32 %v1327_v5, %v1199_v46  ;;  %v3016_v20 = vmul.f32 %v950_v51, %v2970_v24  ;;  %v1015_v21 = vmul.f32 %v951_v54, %v2974_v30  ;;  %2410 = vtanh.f32 %v1137_v3 }
 0x172   : > { %v1072_v25 = vadd.f32 %v1008_v48, %v2934_v33  ;;  %v891_v26 = vmul.f32 0.044715, %v3007_v0  ;;  %v3022_v2 = vmul.f32 0.5, %v2940_v39  ;;  %2412 = vtanh.f32 %v1139_v6 }
 0x173   : > { %v769_v27 = vpop.f32.mrb[24].mxu0  ;;  %v1481_v57 = vpack.c.bf16 %v1391_v19, %v1389_v17  ;;  %v953_v28 = vmul.f32 %v889_v11, %v2996_v55  ;;  %v1074_v32 = vadd.f32 %v1010_v22, %v2944_v43  ;;  %v3030_v36 = vmul.f32 %v952_v37, %v2991_v52 }
 0x174   : > { %v3026_v31 = vadd.f32 %v769_v27, %v2878_v7  ;;  %v771_v18 = vpop.f32.mrb[25].mxu0  ;;  %v1136_v35 = vmul.f32 0.7978846, %v1072_v25  ;;  %v954_v38 = vmul.f32 %v890_v16, %v3001_v61  ;;  %v1203_v34 = vmul.f32 0.5, %v2948_v47 }
 0x175   : > { %v3034_v40 = vadd.f32 %v771_v18, %v2880_v8  ;;  %1684 = vmatprep.mubr.bf16.mxu1 %v1481_v57  ;;  %v773_v39 = vpop.f32.mrb[26].mxu0  ;;  %v2407_v41 = vpop.eup %2406  ;;  %v1138_v46 = vmul.f32 0.7978846, %v1074_v32  ;;  %v955_v48 = vmul.f32 %v891_v26, %v3007_v0  ;;  %v1077_v49 = vadd.f32 %v1013_v9, %v2966_v15 }
 0x176   : > { %v892_v42 = vmul.f32 0.044715, %v3026_v31  ;;  %v3039_v44 = vadd.f32 %v773_v39, %v2878_v7  ;;  %v775_v45 = vpop.f32.mrb[27].mxu0  ;;  %2414 = vtanh.f32 %v1136_v35  ;;  %v2409_v29 = vpop.eup %2408  ;;  %v1324_v22 = vadd.f32 1.0, %v2407_v41 }
 0x177   : > { %v3043_v23 = vadd.f32 %v775_v45, %v2880_v8  ;;  %v893_v50 = vmul.f32 0.044715, %v3034_v40  ;;  %v1326_v51 = vadd.f32 1.0, %v2409_v29  ;;  %2416 = vtanh.f32 %v1138_v46 }
 0x178   : > { %v956_v47 = vmul.f32 %v892_v42, %v3026_v31  ;;  %v3049_v53 = vmul.f32 %v953_v28, %v2996_v55  ;;  %v3052_v62 = vmul.f32 %v954_v38, %v3001_v61  ;;  %v894_v10 = vmul.f32 0.044715, %v3039_v44 }
 0x179   : > { %v1079_v54 = vadd.f32 %v1015_v21, %v2974_v30  ;;  %v1388_v56 = vmul.f32 %v1324_v22, %v1196_v14  ;;  %v1390_v58 = vmul.f32 %v1326_v51, %v1198_v12  ;;  %v895_v59 = vmul.f32 0.044715, %v3043_v23 }
 0x17a   : > { %v1141_v60 = vmul.f32 0.7978846, %v1077_v49  ;;  %v3058_v63 = vmul.f32 %v955_v48, %v3007_v0  ;;  %v1200_v3 = vmul.f32 0.5, %v2934_v33  ;;  %v1202_v5 = vmul.f32 0.5, %v2944_v43 }
 0x17b   : > { %v779_v1 = vpop.f32.mrb[28].mxu0  ;;  %v1143_v6 = vmul.f32 0.7978846, %v1079_v54  ;;  %v2411_v9 = vpop.eup %2410  ;;  %v3063_v11 = vmul.f32 %v956_v47, %v3026_v31  ;;  %v957_v37 = vmul.f32 %v893_v50, %v3034_v40  ;;  %v1480_v14 = vpack.c.bf16 %v1390_v58, %v1388_v56 }
 0x17c   : > { %v3067_v12 = vadd.f32 %v779_v1, %v2878_v7  ;;  %v781_v16 = vpop.f32.mrb[29].mxu0  ;;  %v2413_v17 = vpop.eup %2412  ;;  %v958_v19 = vmul.f32 %v894_v10, %v3039_v44  ;;  %v1329_v33 = vadd.f32 1.0, %v2411_v9  ;;  %2418 = vtanh.f32 %v1141_v60 }
 0x17d   : > { %v3071_v21 = vadd.f32 %v781_v16, %v2880_v8  ;;  %v783_v43 = vpop.f32.mrb[30].mxu0  ;;  %1685 = vmatmul.mubr.bf16.gmra.mrb[8].mxu1 %v1480_v14  ;;  %v959_v25 = vmul.f32 %v895_v59, %v3043_v23  ;;  %v1331_v26 = vadd.f32 1.0, %v2413_v17  ;;  %2420 = vtanh.f32 %v1143_v6 }
 0x17e   : > { %v3075_v27 = vadd.f32 %v783_v43, %v2878_v7  ;;  %v785_v57 = vpop.f32.mrb[31].mxu0  ;;  %v896_v28 = vmul.f32 0.044715, %v3067_v12  ;;  %v1076_v35 = vadd.f32 %v3004_v4, %v2961_v13  ;;  %v1393_v39 = vmul.f32 %v1329_v33, %v3022_v2 }
 0x17f   : > { %v897_v18 = vmul.f32 0.044715, %v3071_v21  ;;  %v3080_v32 = vadd.f32 %v785_v57, %v2880_v8  ;;  %v1395_v41 = vmul.f32 %v1331_v26, %v1203_v34  ;;  %v1078_v45 = vadd.f32 %v3016_v20, %v2970_v24 }
 0x180   : > { %v2415_v38 = vpop.eup %2414  ;;  %v898_v42 = vmul.f32 0.044715, %v3075_v27  ;;  %v3089_v46 = vmul.f32 %v957_v37, %v3034_v40  ;;  %v1140_v22 = vmul.f32 0.7978846, %v1076_v35  ;;  %v3093_v47 = vmul.f32 %v958_v19, %v3039_v44 }
 0x181   : > { %v1328_v29 = vadd.f32 1.0, %v2415_v38  ;;  %v899_v48 = vmul.f32 0.044715, %v3080_v32  ;;  %v2417_v49 = vpop.eup %2416  ;;  %v1483_v4 = vpack.c.bf16 %v1395_v41, %v1393_v39  ;;  %v1205_v2 = vmul.f32 0.5, %v2966_v15 }
 0x182   : > { %v1142_v34 = vmul.f32 0.7978846, %v1078_v45  ;;  %v3097_v50 = vmul.f32 %v959_v25, %v3043_v23  ;;  %v960_v20 = vmul.f32 %v896_v28, %v3067_v12  ;;  %v1330_v51 = vadd.f32 1.0, %v2417_v49 }
 0x183   : > { %v789_v10 = vpop.f32.mrb[32].mxu0  ;;  %v1207_v54 = vmul.f32 0.5, %v2974_v30  ;;  %v961_v56 = vmul.f32 %v897_v18, %v3071_v21  ;;  %1692 = vmatprep.mubr.bf16.mxu1 %v1483_v4  ;;  %v962_v58 = vmul.f32 %v898_v42, %v3075_v27  ;;  %v1392_v59 = vmul.f32 %v1328_v29, %v1200_v3 }
 0x184   : > { %v3104_v60 = vadd.f32 %v789_v10, %v2878_v7  ;;  %v791_v15 = vpop.f32.mrb[33].mxu0  ;;  %v1394_v1 = vmul.f32 %v1330_v51, %v1202_v5  ;;  %v963_v6 = vmul.f32 %v899_v48, %v3080_v32  ;;  %2422 = vtanh.f32 %v1140_v22 }
 0x185   : > { %v3108_v9 = vadd.f32 %v791_v15, %v2880_v8  ;;  %v793_v37 = vpop.f32.mrb[34].mxu0  ;;  %2424 = vtanh.f32 %v1142_v34  ;;  %v1081_v3 = vadd.f32 %v3049_v53, %v2996_v55  ;;  %v1083_v43 = vadd.f32 %v3058_v63, %v3007_v0 }
 0x186   : > { %v900_v30 = vmul.f32 0.044715, %v3104_v60  ;;  %v3112_v14 = vadd.f32 %v793_v37, %v2878_v7  ;;  %v795_v16 = vpop.f32.mrb[35].mxu0  ;;  %v2419_v17 = vpop.eup %2418  ;;  %v1482_v19 = vpack.c.bf16 %v1394_v1, %v1392_v59  ;;  %v3123_v26 = vmul.f32 %v960_v20, %v3067_v12 }
 0x187   : > { %v901_v5 = vmul.f32 0.044715, %v3108_v9  ;;  %v3118_v33 = vadd.f32 %v795_v16, %v2880_v8  ;;  %v2421_v25 = vpop.eup %2420  ;;  %v1333_v57 = vadd.f32 1.0, %v2419_v17  ;;  %v1145_v18 = vmul.f32 0.7978846, %v1081_v3 }
 0x188   : > { %v902_v28 = vmul.f32 0.044715, %v3112_v14  ;;  %v3127_v53 = vmul.f32 %v961_v56, %v3071_v21  ;;  %1693 = vmatmul.mubr.bf16.gmra.mrb[12].mxu1 %v1482_v19  ;;  %v1335_v35 = vadd.f32 1.0, %v2421_v25  ;;  %v1147_v39 = vmul.f32 0.7978846, %v1083_v43 }
 0x189   : > { %v903_v38 = vmul.f32 0.044715, %v3118_v33  ;;  %v3131_v41 = vmul.f32 %v962_v58, %v3075_v27  ;;  %v3134_v63 = vmul.f32 %v963_v6, %v3080_v32  ;;  %v1204_v42 = vmul.f32 0.5, %v2961_v13 }
 0x18a   : > { %v1206_v45 = vmul.f32 0.5, %v2970_v24  ;;  %v964_v29 = vmul.f32 %v900_v30, %v3104_v60  ;;  %v965_v48 = vmul.f32 %v901_v5, %v3108_v9  ;;  %v1397_v22 = vmul.f32 %v1333_v57, %v1205_v2 }
 0x18b   : > { %v1399_v49 = vmul.f32 %v1335_v35, %v1207_v54  ;;  %v799_v4 = vpop.f32.mrb[36].mxu0  ;;  %v966_v34 = vmul.f32 %v902_v28, %v3112_v14  ;;  %2426 = vtanh.f32 %v1145_v18  ;;  %v1080_v10 = vadd.f32 %v3030_v36, %v2991_v52 }
 0x18c   : > { %v3142_v20 = vadd.f32 %v799_v4, %v2878_v7  ;;  %v801_v51 = vpop.f32.mrb[37].mxu0  ;;  %v967_v24 = vmul.f32 %v903_v38, %v3118_v33  ;;  %2428 = vtanh.f32 %v1147_v39  ;;  %v1082_v59 = vadd.f32 %v3052_v62, %v3001_v61 }
 0x18d   : > { %v1485_v13 = vpack.c.bf16 %v1399_v49, %v1397_v22  ;;  %v3148_v56 = vadd.f32 %v801_v51, %v2880_v8  ;;  %v803_v2 = vpop.f32.mrb[38].mxu0  ;;  %v1144_v15 = vmul.f32 0.7978846, %v1080_v10  ;;  %v3157_v36 = vmul.f32 %v964_v29, %v3104_v60 }
 0x18e   : > { %v904_v54 = vmul.f32 0.044715, %v3142_v20  ;;  %v3152_v58 = vadd.f32 %v803_v2, %v2878_v7  ;;  %v805_v1 = vpop.f32.mrb[39].mxu0  ;;  %v2423_v6 = vpop.eup %2422  ;;  %v3160_v37 = vmul.f32 %v965_v48, %v3108_v9  ;;  %v1209_v30 = vmul.f32 0.5, %v2996_v55 }
 0x18f   : > { %1700 = vmatprep.mubr.bf16.mxu1 %v1485_v13  ;;  %v3164_v16 = vadd.f32 %v805_v1, %v2880_v8  ;;  %v2425_v3 = vpop.eup %2424  ;;  %v1332_v17 = vadd.f32 1.0, %v2423_v6  ;;  %v905_v19 = vmul.f32 0.044715, %v3148_v56  ;;  %v1211_v62 = vmul.f32 0.5, %v3007_v0 }
 0x190   : > { %v1146_v5 = vmul.f32 0.7978846, %v1082_v59  ;;  %v3169_v43 = vmul.f32 %v966_v34, %v3112_v14  ;;  %v1334_v25 = vadd.f32 1.0, %v2425_v3  ;;  %v906_v57 = vmul.f32 0.044715, %v3152_v58 }
 0x191   : > { %2430 = vtanh.f32 %v1144_v15  ;;  %v3173_v28 = vmul.f32 %v967_v24, %v3118_v33  ;;  %v968_v55 = vmul.f32 %v904_v54, %v3142_v20  ;;  %v3177_v18 = vmul.f32 0.5, %v2991_v52 }
 0x192   : > { %2432 = vtanh.f32 %v1146_v5  ;;  %v1396_v35 = vmul.f32 %v1332_v17, %v1204_v42  ;;  %v1398_v38 = vmul.f32 %v1334_v25, %v1206_v45  ;;  %v907_v0 = vmul.f32 0.044715, %v3164_v16 }
 0x193   : > { %v809_v39 = vpop.f32.mrb[40].mxu0  ;;  %v1085_v29 = vadd.f32 %v3089_v46, %v3034_v40  ;;  %v969_v48 = vmul.f32 %v905_v19, %v3148_v56  ;;  %v1210_v22 = vmul.f32 0.5, %v3001_v61  ;;  %v1087_v52 = vadd.f32 %v3097_v50, %v3043_v23 }
 0x194   : > { %v3185_v49 = vadd.f32 %v809_v39, %v2878_v7  ;;  %v811_v4 = vpop.f32.mrb[41].mxu0  ;;  %v1484_v34 = vpack.c.bf16 %v1398_v38, %v1396_v35  ;;  %v970_v42 = vmul.f32 %v906_v57, %v3152_v58  ;;  %v3194_v13 = vmul.f32 %v968_v55, %v3142_v20 }
 0x195   : > { %v3191_v45 = vadd.f32 %v811_v4, %v2880_v8  ;;  %v1149_v51 = vmul.f32 0.7978846, %v1085_v29  ;;  %v813_v10 = vpop.f32.mrb[42].mxu0  ;;  %v2427_v46 = vpop.eup %2426  ;;  %v1151_v24 = vmul.f32 0.7978846, %v1087_v52  ;;  %v971_v15 = vmul.f32 %v907_v0, %v3164_v16 }
 0x196   : > { %v908_v61 = vmul.f32 0.044715, %v3185_v49  ;;  %v3198_v2 = vadd.f32 %v813_v10, %v2878_v7  ;;  %v815_v54 = vpop.f32.mrb[43].mxu0  ;;  %v2429_v50 = vpop.eup %2428  ;;  %1701 = vmatmul.mubr.bf16.gmra.mrb[16].mxu1 %v1484_v34  ;;  %v1337_v59 = vadd.f32 1.0, %v2427_v46  ;;  %v1084_v1 = vadd.f32 %v3063_v11, %v3026_v31 }
 0x197   : > { %2434 = vtanh.f32 %v1149_v51  ;;  %v3204_v6 = vmul.f32 %v969_v48, %v3148_v56  ;;  %v1339_v3 = vadd.f32 1.0, %v2429_v50  ;;  %v909_v17 = vmul.f32 0.044715, %v3191_v45 }
 0x198   : > { %2436 = vtanh.f32 %v1151_v24  ;;  %v3208_v19 = vmul.f32 %v970_v42, %v3152_v58  ;;  %v1213_v5 = vmul.f32 0.5, %v3034_v40  ;;  %v1086_v25 = vadd.f32 %v3093_v47, %v3039_v44 }
 0x199   : > { %v1148_v57 = vmul.f32 0.7978846, %v1084_v1  ;;  %v1401_v55 = vmul.f32 %v1337_v59, %v1209_v30  ;;  %v1403_v35 = vmul.f32 %v1339_v3, %v1211_v62  ;;  %v972_v11 = vmul.f32 %v908_v61, %v3185_v49 }
 0x19a   : > { %v910_v38 = vmul.f32 0.044715, %v3198_v2  ;;  %v3216_v39 = vmul.f32 %v971_v15, %v3164_v16  ;;  %v1215_v29 = vmul.f32 0.5, %v3043_v23  ;;  %v1150_v48 = vmul.f32 0.7978846, %v1086_v25 }
 0x19b   : > { %v2431_v0 = vpop.eup %2430  ;;  %2438 = vtanh.f32 %v1148_v57  ;;  %v819_v4 = vpop.f32.mrb[44].mxu0  ;;  %v1487_v52 = vpack.c.bf16 %v1403_v35, %v1401_v55  ;;  %v973_v47 = vmul.f32 %v909_v17, %v3191_v45  ;;  %v3221_v30 = vadd.f32 %v815_v54, %v2880_v8 }
 0x19c   : > { %v2433_v40 = vpop.eup %2432  ;;  %v1336_v34 = vadd.f32 1.0, %v2431_v0  ;;  %v821_v62 = vpop.f32.mrb[45].mxu0  ;;  %2440 = vtanh.f32 %v1150_v48  ;;  %v3224_v51 = vadd.f32 %v819_v4, %v2878_v7  ;;  %v3230_v46 = vmul.f32 %v972_v11, %v3185_v49 }
 0x19d   : > { %v1338_v42 = vadd.f32 1.0, %v2433_v40  ;;  %v3227_v10 = vadd.f32 %v821_v62, %v2880_v8  ;;  %v823_v23 = vpop.f32.mrb[46].mxu0  ;;  %1708 = vmatprep.mubr.bf16.mxu1 %v1487_v52  ;;  %v974_v61 = vmul.f32 %v910_v38, %v3198_v2  ;;  %v1089_v24 = vadd.f32 %v3127_v53, %v3071_v21 }
 0x19e   : > { %v1091_v54 = vadd.f32 %v3134_v63, %v3080_v32  ;;  %v825_v50 = vpop.f32.mrb[47].mxu0  ;;  %v1400_v59 = vmul.f32 %v1336_v34, %v3177_v18  ;;  %v1212_v1 = vmul.f32 0.5, %v3026_v31  ;;  %v911_v3 = vmul.f32 0.044715, %v3221_v30 }
 0x19f   : > { %v1402_v15 = vmul.f32 %v1338_v42, %v1210_v22  ;;  %v3241_v17 = vmul.f32 %v973_v47, %v3191_v45  ;;  %v912_v25 = vmul.f32 0.044715, %v3224_v51  ;;  %v1153_v57 = vmul.f32 0.7978846, %v1089_v24 }
 0x1a0   : > { %v1155_v55 = vmul.f32 0.7978846, %v1091_v54  ;;  %v1214_v11 = vmul.f32 0.5, %v3039_v44  ;;  %v913_v63 = vmul.f32 0.044715, %v3227_v10  ;;  %v3247_v18 = vadd.f32 %v823_v23, %v2878_v7 }
 0x1a1   : > { %v2435_v35 = vpop.eup %2434  ;;  %v1486_v53 = vpack.c.bf16 %v1402_v15, %v1400_v59  ;;  %v3250_v38 = vmul.f32 %v974_v61, %v3198_v2  ;;  %2442 = vtanh.f32 %v1153_v57  ;;  %v1088_v0 = vadd.f32 %v3123_v26, %v3067_v12 }
 0x1a2   : > { %v2437_v22 = vpop.eup %2436  ;;  %v1341_v31 = vadd.f32 1.0, %v2435_v35  ;;  %v975_v4 = vmul.f32 %v911_v3, %v3221_v30  ;;  %v3256_v44 = vmul.f32 0.5, %v3071_v21  ;;  %2444 = vtanh.f32 %v1155_v55 }
 0x1a3   : > { %1709 = vmatmul.mubr.bf16.gmra.mrb[20].mxu1 %v1486_v53  ;;  %v1343_v48 = vadd.f32 1.0, %v2437_v22  ;;  %v829_v40 = vpop.f32.mrb[48].mxu0  ;;  %v976_v52 = vmul.f32 %v912_v25, %v3224_v51  ;;  %v914_v34 = vmul.f32 0.044715, %v3247_v18  ;;  %v1090_v47 = vadd.f32 %v3131_v41, %v3075_v27 }
 0x1a4   : > { %v1152_v62 = vmul.f32 0.7978846, %v1088_v0  ;;  %v831_v42 = vpop.f32.mrb[49].mxu0  ;;  %v1405_v26 = vmul.f32 %v1341_v31, %v1213_v5  ;;  %v977_v24 = vmul.f32 %v913_v63, %v3227_v10  ;;  %v3264_v54 = vadd.f32 %v825_v50, %v2880_v8 }
 0x1a5   : > { %v2439_v23 = vpop.eup %2438  ;;  %v1407_v61 = vmul.f32 %v1343_v48, %v1215_v29  ;;  %v833_v21 = vpop.f32.mrb[50].mxu0  ;;  %v1219_v15 = vmul.f32 0.5, %v3080_v32  ;;  %v1154_v3 = vmul.f32 0.7978846, %v1090_v47  ;;  %v978_v41 = vmul.f32 %v914_v34, %v3247_v18 }
 0x1a6   : > { %v1340_v59 = vadd.f32 1.0, %v2439_v23  ;;  %2446 = vtanh.f32 %v1152_v62  ;;  %v835_v25 = vpop.f32.mrb[51].mxu0  ;;  %v2441_v57 = vpop.eup %2440  ;;  %v3269_v35 = vadd.f32 %v829_v40, %v2878_v7  ;;  %v3272_v5 = vadd.f32 %v831_v42, %v2880_v8 }
 0x1a7   : > { %v1489_v55 = vpack.c.bf16 %v1407_v61, %v1405_v26  ;;  %v1342_v29 = vadd.f32 1.0, %v2441_v57  ;;  %v3275_v50 = vmul.f32 %v975_v4, %v3221_v30  ;;  %v3278_v53 = vmul.f32 %v976_v52, %v3224_v51 }
 0x1a8   : > { %2448 = vtanh.f32 %v1154_v3  ;;  %v3281_v32 = vmul.f32 %v977_v24, %v3227_v10  ;;  %v1216_v63 = vmul.f32 0.5, %v3067_v12  ;;  %v915_v22 = vmul.f32 0.044715, %v3264_v54 }
 0x1a9   : > { %1716 = vmatprep.mubr.bf16.mxu1 %v1489_v55  ;;  %v1093_v31 = vadd.f32 %v3160_v37, %v3108_v9  ;;  %v1404_v0 = vmul.f32 %v1340_v59, %v1212_v1  ;;  %v1406_v48 = vmul.f32 %v1342_v29, %v1214_v11  ;;  %v916_v4 = vmul.f32 0.044715, %v3269_v35 }
 0x1aa   : > { %v1095_v40 = vadd.f32 %v3173_v28, %v3118_v33  ;;  %v3291_v52 = vmul.f32 %v978_v41, %v3247_v18  ;;  %v1218_v34 = vmul.f32 0.5, %v3075_v27  ;;  %v917_v47 = vmul.f32 0.044715, %v3272_v5 }
 0x1ab   : > { %v1157_v12 = vmul.f32 0.7978846, %v1093_v31  ;;  %v839_v62 = vpop.f32.mrb[52].mxu0  ;;  %v2443_v42 = vpop.eup %2442  ;;  %v1488_v23 = vpack.c.bf16 %v1406_v48, %v1404_v0  ;;  %v3296_v37 = vadd.f32 %v833_v21, %v2878_v7  ;;  %v1092_v1 = vadd.f32 %v3157_v36, %v3104_v60 }
 0x1ac   : > { %v1159_v26 = vmul.f32 0.7978846, %v1095_v40  ;;  %v841_v11 = vpop.f32.mrb[53].mxu0  ;;  %v2445_v28 = vpop.eup %2444  ;;  %v1345_v61 = vadd.f32 1.0, %v2443_v42  ;;  %v979_v24 = vmul.f32 %v915_v22, %v3264_v54  ;;  %v3302_v27 = vmul.f32 0.5, %v3108_v9 }
 0x1ad   : > { %2450 = vtanh.f32 %v1157_v12  ;;  %v843_v59 = vpop.f32.mrb[54].mxu0  ;;  %1717 = vmatmul.mubr.bf16.gmra.mrb[24].mxu1 %v1488_v23  ;;  %v1347_v3 = vadd.f32 1.0, %v2445_v28  ;;  %v918_v57 = vmul.f32 0.044715, %v3296_v37  ;;  %v1094_v21 = vadd.f32 %v3169_v43, %v3112_v14 }
 0x1ae   : > { %2452 = vtanh.f32 %v1159_v26  ;;  %v845_v55 = vpop.f32.mrb[55].mxu0  ;;  %v980_v36 = vmul.f32 %v916_v4, %v3269_v35  ;;  %v981_v41 = vmul.f32 %v917_v47, %v3272_v5  ;;  %v1223_v29 = vmul.f32 0.5, %v3118_v33 }
 0x1af   : > { %v1156_v22 = vmul.f32 0.7978846, %v1092_v1  ;;  %v1409_v31 = vmul.f32 %v1345_v61, %v3256_v44  ;;  %v1411_v0 = vmul.f32 %v1347_v3, %v1219_v15  ;;  %v1158_v48 = vmul.f32 0.7978846, %v1094_v21 }
 0x1b0   : > { %v2447_v9 = vpop.eup %2446  ;;  %v3312_v40 = vadd.f32 %v835_v25, %v2880_v8  ;;  %v3315_v43 = vadd.f32 %v839_v62, %v2878_v7  ;;  %v3318_v4 = vadd.f32 %v841_v11, %v2880_v8  ;;  %v3321_v33 = vmul.f32 %v979_v24, %v3264_v54 }
 0x1b1   : > { %v1344_v12 = vadd.f32 1.0, %v2447_v9  ;;  %2454 = vtanh.f32 %v1156_v22  ;;  %v1491_v42 = vpack.c.bf16 %v1411_v0, %v1409_v31  ;;  %v982_v44 = vmul.f32 %v918_v57, %v3296_v37 }
 0x1b2   : > { %v2449_v47 = vpop.eup %2448  ;;  %2456 = vtanh.f32 %v1158_v48  ;;  %v3325_v25 = vmul.f32 %v980_v36, %v3269_v35  ;;  %v3328_v23 = vmul.f32 %v981_v41, %v3272_v5  ;;  %v919_v62 = vmul.f32 0.044715, %v3312_v40 }
 0x1b3   : > { %v1346_v15 = vadd.f32 1.0, %v2449_v47  ;;  %v849_v26 = vpop.f32.mrb[56].mxu0  ;;  %1724 = vmatprep.mubr.bf16.mxu1 %v1491_v42  ;;  %v1220_v1 = vmul.f32 0.5, %v3104_v60  ;;  %v920_v11 = vmul.f32 0.044715, %v3315_v43  ;;  %v1097_v28 = vadd.f32 %v3204_v6, %v3148_v56 }
 0x1b4   : > { %v1099_v61 = vadd.f32 %v3216_v39, %v3164_v16  ;;  %v851_v24 = vpop.f32.mrb[57].mxu0  ;;  %v1408_v3 = vmul.f32 %v1344_v12, %v1216_v63  ;;  %v1222_v21 = vmul.f32 0.5, %v3112_v14  ;;  %v921_v36 = vmul.f32 0.044715, %v3318_v4 }
 0x1b5   : > { %v1410_v57 = vmul.f32 %v1346_v15, %v1218_v34  ;;  %v853_v41 = vpop.f32.mrb[58].mxu0  ;;  %v3340_v22 = vmul.f32 %v982_v44, %v3296_v37  ;;  %v1161_v60 = vmul.f32 0.7978846, %v1097_v28  ;;  %v3343_v31 = vadd.f32 %v843_v59, %v2878_v7 }
 0x1b6   : > { %v1163_v9 = vmul.f32 0.7978846, %v1099_v61  ;;  %v3345_v6 = vpop.f32.mrb[59].mxu0  ;;  %v983_v63 = vmul.f32 %v919_v62, %v3312_v40  ;;  %v3349_v34 = vmul.f32 0.5, %v3148_v56  ;;  %v1096_v14 = vadd.f32 %v3194_v13, %v3142_v20 }
 0x1b7   : > { %v2451_v0 = vpop.eup %2450  ;;  %v1490_v39 = vpack.c.bf16 %v1410_v57, %v1408_v3  ;;  %v984_v47 = vmul.f32 %v920_v11, %v3315_v43  ;;  %2458 = vtanh.f32 %v1161_v60  ;;  %v1098_v59 = vadd.f32 %v3208_v19, %v3152_v58 }
 0x1b8   : > { %v2453_v48 = vpop.eup %2452  ;;  %v1349_v12 = vadd.f32 1.0, %v2451_v0  ;;  %2460 = vtanh.f32 %v1163_v9  ;;  %v922_v44 = vmul.f32 0.044715, %v3343_v31  ;;  %v1160_v15 = vmul.f32 0.7978846, %v1096_v14 }
 0x1b9   : > { %1725 = vmatmul.mubr.bf16.gmra.mrb[28].mxu1 %v1490_v39  ;;  %v1351_v42 = vadd.f32 1.0, %v2453_v48  ;;  %v985_v62 = vmul.f32 %v921_v36, %v3318_v4  ;;  %v1227_v13 = vmul.f32 0.5, %v3164_v16  ;;  %v1162_v28 = vmul.f32 0.7978846, %v1098_v59 }
 0x1ba   : > { %v1413_v56 = vmul.f32 %v1349_v12, %v3302_v27  ;;  %2462 = vtanh.f32 %v1160_v15  ;;  %v3361_v11 = vadd.f32 %v845_v55, %v2880_v8  ;;  %v3364_v19 = vadd.f32 %v849_v26, %v2878_v7 }
 0x1bb   : > { %v2455_v61 = vpop.eup %2454  ;;  %v1415_v3 = vmul.f32 %v1351_v42, %v1223_v29  ;;  %v859_v57 = vpop.f32.mrb[60].mxu0  ;;  %v3367_v0 = vmul.f32 %v983_v63, %v3312_v40  ;;  %2464 = vtanh.f32 %v1162_v28  ;;  %v3370_v27 = vadd.f32 %v851_v24, %v2880_v8 }
 0x1bc   : > { %v2457_v60 = vpop.eup %2456  ;;  %v1348_v9 = vadd.f32 1.0, %v2455_v61  ;;  %v861_v16 = vpop.f32.mrb[61].mxu0  ;;  %v986_v39 = vmul.f32 %v922_v44, %v3343_v31  ;;  %v923_v55 = vmul.f32 0.044715, %v3361_v11  ;;  %v3377_v26 = vmul.f32 %v984_v47, %v3315_v43 }
 0x1bd   : > { %v1493_v36 = vpack.c.bf16 %v1415_v3, %v1413_v56  ;;  %v1350_v29 = vadd.f32 1.0, %v2457_v60  ;;  %v3374_v14 = vpop.f32.mrb[62].mxu0  ;;  %v924_v48 = vmul.f32 0.044715, %v3364_v19  ;;  %v1101_v63 = vadd.f32 %v3241_v17, %v3191_v45 }
 0x1be   : > { %v1103_v24 = vadd.f32 %v3275_v50, %v3221_v30  ;;  %v3384_v12 = vpop.f32.mrb[63].mxu0  ;;  %v1412_v59 = vmul.f32 %v1348_v9, %v1220_v1  ;;  %v1224_v44 = vmul.f32 0.5, %v3142_v20  ;;  %v1226_v15 = vmul.f32 0.5, %v3152_v58 }
 0x1bf   : > { %1732 = vmatprep.mubr.bf16.mxu1 %v1493_v36  ;;  %v1414_v42 = vmul.f32 %v1350_v29, %v1222_v21  ;;  %v3389_v47 = vmul.f32 %v985_v62, %v3318_v4  ;;  %v925_v56 = vmul.f32 0.044715, %v3370_v27  ;;  %v1165_v28 = vmul.f32 0.7978846, %v1101_v63 }
 0x1c0   : > { %v1167_v61 = vmul.f32 0.7978846, %v1103_v24  ;;  %v3393_v3 = vmul.f32 %v986_v39, %v3343_v31  ;;  %v987_v50 = vmul.f32 %v923_v55, %v3361_v11  ;;  %v3397_v1 = vadd.f32 %v853_v41, %v2878_v7 }
 0x1c1   : > { %v1492_v17 = vpack.c.bf16 %v1414_v42, %v1412_v59  ;;  %v2459_v21 = vpop.eup %2458  ;;  %v988_v20 = vmul.f32 %v924_v48, %v3364_v19  ;;  %2466 = vtanh.f32 %v1165_v28  ;;  %v1100_v58 = vadd.f32 %v3230_v46, %v3185_v49 }
 0x1c2   : > { %v1102_v62 = vadd.f32 %v3250_v38, %v3198_v2  ;;  %v2461_v60 = vpop.eup %2460  ;;  %v1353_v9 = vadd.f32 1.0, %v2459_v21  ;;  %v1229_v36 = vmul.f32 0.5, %v3191_v45  ;;  %2468 = vtanh.f32 %v1167_v61 }
 0x1c3   : > { %1733 = vmatmul.mubr.bf16.gmra.mrb[32].mxu1 %v1492_v17  ;;  %v926_v29 = vmul.f32 0.044715, %v3397_v1  ;;  %v1355_v41 = vadd.f32 1.0, %v2461_v60  ;;  %v989_v39 = vmul.f32 %v925_v56, %v3370_v27  ;;  %v1164_v55 = vmul.f32 0.7978846, %v1100_v58 }
 0x1c4   : > { %v1166_v48 = vmul.f32 0.7978846, %v1102_v62  ;;  %v2463_v63 = vpop.eup %2462  ;;  %v1417_v24 = vmul.f32 %v1353_v9, %v3349_v34  ;;  %v1231_v46 = vmul.f32 0.5, %v3221_v30  ;;  %v3411_v38 = vadd.f32 %v3345_v6, %v2880_v8 }
 0x1c5   : > { %v3414_v59 = vadd.f32 %v859_v57, %v2878_v7  ;;  %v2465_v45 = vpop.eup %2464  ;;  %v1419_v42 = vmul.f32 %v1355_v41, %v1227_v13  ;;  %v1352_v28 = vadd.f32 1.0, %v2463_v63  ;;  %2470 = vtanh.f32 %v1164_v55 }
 0x1c6   : > { %v3417_v56 = vadd.f32 %v861_v16, %v2880_v8  ;;  %v1354_v61 = vadd.f32 1.0, %v2465_v45  ;;  %v3420_v17 = vmul.f32 %v987_v50, %v3361_v11  ;;  %v990_v30 = vmul.f32 %v926_v29, %v3397_v1 }
 0x1c7   : > { %2472 = vtanh.f32 %v1166_v48  ;;  %v1495_v34 = vpack.c.bf16 %v1419_v42, %v1417_v24  ;;  %v1416_v6 = vmul.f32 %v1352_v28, %v1224_v44  ;;  %v927_v21 = vmul.f32 0.044715, %v3411_v38 }
 0x1c8   : > { %v928_v57 = vmul.f32 0.044715, %v3414_v59  ;;  %v1418_v58 = vmul.f32 %v1354_v61, %v1226_v15  ;;  %v929_v13 = vmul.f32 0.044715, %v3417_v56  ;;  %v1105_v16 = vadd.f32 %v3281_v32, %v3227_v10 }
 0x1c9   : > { %v1107_v62 = vadd.f32 %v3321_v33, %v3264_v54  ;;  %1740 = vmatprep.mubr.bf16.mxu1 %v1495_v34  ;;  %v3431_v50 = vmul.f32 %v988_v20, %v3364_v19  ;;  %v3434_v60 = vmul.f32 %v989_v39, %v3370_v27  ;;  %v1228_v44 = vmul.f32 0.5, %v3185_v49 }
 0x1ca   : > { %v1230_v9 = vmul.f32 0.5, %v3198_v2  ;;  %v1494_v15 = vpack.c.bf16 %v1418_v58, %v1416_v6  ;;  %v3439_v29 = vmul.f32 %v990_v30, %v3397_v1  ;;  %v1169_v41 = vmul.f32 0.7978846, %v1105_v16 }
 0x1cb   : > { %v1171_v32 = vmul.f32 0.7978846, %v1107_v62  ;;  %v2467_v55 = vpop.eup %2466  ;;  %v991_v33 = vmul.f32 %v927_v21, %v3411_v38  ;;  %v992_v48 = vmul.f32 %v928_v57, %v3414_v59  ;;  %v3445_v20 = vadd.f32 %v3374_v14, %v2878_v7 }
 0x1cc   : > { %v1104_v49 = vadd.f32 %v3278_v53, %v3224_v51  ;;  %v2469_v39 = vpop.eup %2468  ;;  %1741 = vmatmul.mubr.bf16.gmra.mrb[36].mxu1 %v1494_v15  ;;  %v1357_v2 = vadd.f32 1.0, %v2467_v55  ;;  %v993_v63 = vmul.f32 %v929_v13, %v3417_v56  ;;  %2474 = vtanh.f32 %v1169_v41 }
 0x1cd   : > { %v1106_v24 = vadd.f32 %v3291_v52, %v3247_v18  ;;  %v1359_v45 = vadd.f32 1.0, %v2469_v39  ;;  %2476 = vtanh.f32 %v1171_v32  ;;  %v930_v42 = vmul.f32 0.044715, %v3445_v20 }
 0x1ce   : > { %v1168_v28 = vmul.f32 0.7978846, %v1104_v49  ;;  %v1233_v7 = vmul.f32 0.5, %v3227_v10  ;;  %v1235_v14 = vmul.f32 0.5, %v3264_v54  ;;  %v3457_v53 = vadd.f32 %v3384_v12, %v2880_v8 }
 0x1cf   : > { %v1170_v61 = vmul.f32 0.7978846, %v1106_v24  ;;  %v2471_v30 = vpop.eup %2470  ;;  %v1421_v34 = vmul.f32 %v1357_v2, %v1229_v36  ;;  %v1423_v6 = vmul.f32 %v1359_v45, %v1231_v46  ;;  %v1109_v52 = vadd.f32 %v3328_v23, %v3272_v5 }
 0x1d0   : > { %2478 = vtanh.f32 %v1168_v28  ;;  %v1356_v57 = vadd.f32 1.0, %v2471_v30  ;;  %v1055_v58 = vmul.f32 %v991_v33, %v3411_v38  ;;  %v1111_v10 = vadd.f32 %v3367_v0, %v3312_v40 }
 0x1d1   : > { %v2473_v21 = vpop.eup %2472  ;;  %2480 = vtanh.f32 %v1170_v61  ;;  %v1497_v54 = vpack.c.bf16 %v1423_v6, %v1421_v34  ;;  %v994_v8 = vmul.f32 %v930_v42, %v3445_v20  ;;  %v1173_v12 = vmul.f32 0.7978846, %v1109_v52 }
 0x1d2   : > { %v1358_v13 = vadd.f32 1.0, %v2473_v21  ;;  %v3466_v36 = vmul.f32 %v992_v48, %v3414_v59  ;;  %v3469_v46 = vmul.f32 %v993_v63, %v3417_v56  ;;  %v931_v23 = vmul.f32 0.044715, %v3457_v53 }
 0x1d3   : > { %v1175_v16 = vmul.f32 0.7978846, %v1111_v10  ;;  %1748 = vmatprep.mubr.bf16.mxu1 %v1497_v54  ;;  %v1420_v62 = vmul.f32 %v1356_v57, %v1228_v44  ;;  %2482 = vtanh.f32 %v1173_v12  ;;  %v1108_v0 = vadd.f32 %v3325_v25, %v3269_v35 }
 0x1d4   : > { %v1422_v15 = vmul.f32 %v1358_v13, %v1230_v9  ;;  %v1232_v41 = vmul.f32 0.5, %v3224_v51  ;;  %v1234_v32 = vmul.f32 0.5, %v3247_v18  ;;  %v1110_v55 = vadd.f32 %v3340_v22, %v3296_v37 }
 0x1d5   : > { %2484 = vtanh.f32 %v1175_v16  ;;  %v3479_v48 = vmul.f32 %v994_v8, %v3445_v20  ;;  %v1172_v49 = vmul.f32 0.7978846, %v1108_v0  ;;  %v1113_v44 = vadd.f32 %v3389_v47, %v3318_v4 }
 0x1d6   : > { %v1496_v33 = vpack.c.bf16 %v1422_v15, %v1420_v62  ;;  %v2475_v9 = vpop.eup %2474  ;;  %v995_v39 = vmul.f32 %v931_v23, %v3457_v53  ;;  %v1237_v25 = vmul.f32 0.5, %v3272_v5  ;;  %v1174_v51 = vmul.f32 0.7978846, %v1110_v55 }
 0x1d7   : > { %v1115_v18 = vadd.f32 %v3420_v17, %v3361_v11  ;;  %v2477_v2 = vpop.eup %2476  ;;  %v1361_v22 = vadd.f32 1.0, %v2475_v9  ;;  %2486 = vtanh.f32 %v1172_v49  ;;  %v1177_v63 = vmul.f32 0.7978846, %v1113_v44 }
 0x1d8   : > { %1749 = vmatmul.mubr.bf16.gmra.mrb[40].mxu1 %v1496_v33  ;;  %v1112_v24 = vadd.f32 %v3377_v26, %v3315_v43  ;;  %v1363_v45 = vadd.f32 1.0, %v2477_v2  ;;  %2488 = vtanh.f32 %v1174_v51  ;;  %v1114_v42 = vadd.f32 %v3393_v3, %v3343_v31 }
 0x1d9   : > { %v1179_v47 = vmul.f32 0.7978846, %v1115_v18  ;;  %v1425_v5 = vmul.f32 %v1361_v22, %v1233_v7  ;;  %v1239_v61 = vmul.f32 0.5, %v3312_v40  ;;  %2490 = vtanh.f32 %v1177_v63 }
 0x1da   : > { %v2479_v28 = vpop.eup %2478  ;;  %v1176_v17 = vmul.f32 0.7978846, %v1112_v24  ;;  %v1427_v34 = vmul.f32 %v1363_v45, %v1235_v14  ;;  %v1178_v52 = vmul.f32 0.7978846, %v1114_v42  ;;  %v1059_v26 = vmul.f32 %v995_v39, %v3457_v53 }
 0x1db   : > { %v2481_v30 = vpop.eup %2480  ;;  %v1360_v6 = vadd.f32 1.0, %v2479_v28  ;;  %2492 = vtanh.f32 %v1179_v47  ;;  %v1117_v57 = vadd.f32 %v3434_v60, %v3370_v27  ;;  %v1236_v3 = vmul.f32 0.5, %v3269_v35 }
 0x1dc   : > { %v1362_v21 = vadd.f32 1.0, %v2481_v30  ;;  %2494 = vtanh.f32 %v1176_v17  ;;  %v1499_v10 = vpack.c.bf16 %v1427_v34, %v1425_v5  ;;  %v1119_v40 = vadd.f32 %v1055_v58, %v3411_v38 }
 0x1dd   : > { %2496 = vtanh.f32 %v1178_v52  ;;  %v2483_v7 = vpop.eup %2482  ;;  %v1424_v54 = vmul.f32 %v1360_v6, %v1232_v41  ;;  %v1238_v14 = vmul.f32 0.5, %v3296_v37  ;;  %v1181_v8 = vmul.f32 0.7978846, %v1117_v57 }
 0x1de   : > { %v1426_v13 = vmul.f32 %v1362_v21, %v1234_v32  ;;  %1756 = vmatprep.mubr.bf16.mxu1 %v1499_v10  ;;  %v1365_v23 = vadd.f32 1.0, %v2483_v7  ;;  %v1183_v16 = vmul.f32 0.7978846, %v1119_v40  ;;  %v1116_v62 = vadd.f32 %v3431_v50, %v3364_v19 }
 0x1df   : > { %v2485_v12 = vpop.eup %2484  ;;  %v1118_v60 = vadd.f32 %v3439_v29, %v3397_v1  ;;  %v1241_v58 = vmul.f32 0.5, %v3318_v4  ;;  %2498 = vtanh.f32 %v1181_v8  ;;  %v1243_v0 = vmul.f32 0.5, %v3361_v11 }
 0x1e0   : > { %v1498_v35 = vpack.c.bf16 %v1426_v13, %v1424_v54  ;;  %v1367_v15 = vadd.f32 1.0, %v2485_v12  ;;  %2500 = vtanh.f32 %v1183_v16  ;;  %v1180_v37 = vmul.f32 0.7978846, %v1116_v62 }
 0x1e1   : > { %v1182_v41 = vmul.f32 0.7978846, %v1118_v60  ;;  %v2487_v32 = vpop.eup %2486  ;;  %v1429_v55 = vmul.f32 %v1365_v23, %v1237_v25  ;;  %v1121_v50 = vadd.f32 %v3469_v46, %v3417_v56  ;;  %v1123_v49 = vadd.f32 %v1059_v26, %v3457_v53 }
 0x1e2   : > { %1757 = vmatmul.mubr.bf16.gmra.mrb[44].mxu1 %v1498_v35  ;;  %v1431_v33 = vmul.f32 %v1367_v15, %v1239_v61  ;;  %v2489_v29 = vpop.eup %2488  ;;  %v1364_v44 = vadd.f32 1.0, %v2487_v32  ;;  %v1240_v9 = vmul.f32 0.5, %v3315_v43  ;;  %v1242_v4 = vmul.f32 0.5, %v3343_v31 }
 0x1e3   : > { %2502 = vtanh.f32 %v1180_v37  ;;  %v2491_v11 = vpop.eup %2490  ;;  %v1366_v51 = vadd.f32 1.0, %v2489_v29  ;;  %v1185_v18 = vmul.f32 0.7978846, %v1121_v50  ;;  %v1187_v63 = vmul.f32 0.7978846, %v1123_v49 }
 0x1e4   : > { %v1501_v39 = vpack.c.bf16 %v1431_v33, %v1429_v55  ;;  %2504 = vtanh.f32 %v1182_v41  ;;  %v1428_v25 = vmul.f32 %v1364_v44, %v1236_v3  ;;  %v1369_v22 = vadd.f32 1.0, %v2491_v11 }
 0x1e5   : > { %v2493_v2 = vpop.eup %2492  ;;  %v1120_v46 = vadd.f32 %v3466_v36, %v3414_v59  ;;  %v1430_v45 = vmul.f32 %v1366_v51, %v1238_v14  ;;  %2506 = vtanh.f32 %v1185_v18  ;;  %v1122_v43 = vadd.f32 %v3479_v48, %v3445_v20 }
 0x1e6   : > { %v2495_v24 = vpop.eup %2494  ;;  %1764 = vmatprep.mubr.bf16.mxu1 %v1501_v39  ;;  %v1371_v47 = vadd.f32 1.0, %v2493_v2  ;;  %v1433_v42 = vmul.f32 %v1369_v22, %v1241_v58  ;;  %2508 = vtanh.f32 %v1187_v63  ;;  %v1245_v10 = vmul.f32 0.5, %v3370_v27  ;;  %v1445_v2 = vld [vmem:[#allocation2 + $0x8] sm:$0xff] }
 0x1e7   : > { %v2497_v31 = vpop.eup %2496  ;;  %v1368_v28 = vadd.f32 1.0, %v2495_v24  ;;  %v1184_v5 = vmul.f32 0.7978846, %v1120_v46  ;;  %v1500_v61 = vpack.c.bf16 %v1430_v45, %v1428_v25  ;;  %v1186_v34 = vmul.f32 0.7978846, %v1122_v43  ;;  %v1446_v46 = vld [vmem:[#allocation2 + $0x10] sm:$0xff] }
 0x1e8   : > { %v1435_v17 = vmul.f32 %v1371_v47, %v1243_v0  ;;  %v1370_v30 = vadd.f32 1.0, %v2497_v31  ;;  %v1247_v3 = vmul.f32 0.5, %v3411_v38  ;;  %v1244_v12 = vmul.f32 0.5, %v3364_v19  ;;  %v1447_v43 = vld [vmem:[#allocation2 + $0x18] sm:$0xff] }
 0x1e9   : > { %2510 = vtanh.f32 %v1184_v5  ;;  %v2499_v6 = vpop.eup %2498  ;;  %v1432_v52 = vmul.f32 %v1368_v28, %v1240_v9  ;;  %v1246_v23 = vmul.f32 0.5, %v3397_v1  ;;  %v1249_v27 = vmul.f32 0.5, %v3417_v56 }
 0x1ea   : > { %1765 = vmatmul.mubr.bf16.gmra.mrb[48].mxu1 %v1500_v61  ;;  %v1503_v36 = vpack.c.bf16 %v1435_v17, %v1433_v42  ;;  %v1434_v21 = vmul.f32 %v1370_v30, %v1242_v4  ;;  %2512 = vtanh.f32 %v1186_v34  ;;  %v2501_v26 = vpop.eup %2500  ;;  %v1373_v57 = vadd.f32 1.0, %v2499_v6  ;;  %v1448_v17 = vld [vmem:[#allocation2 + $0x20] sm:$0xff] }
 0x1eb   : > { %v1375_v40 = vadd.f32 1.0, %v2501_v26  ;;  %v1251_v38 = vmul.f32 0.5, %v3457_v53  ;;  %v1248_v50 = vmul.f32 0.5, %v3414_v59  ;;  %v1250_v49 = vmul.f32 0.5, %v3445_v20  ;;  %v1444_v53 = vld [vmem:[#allocation2] sm:$0xff] }
 0x1ec   : > { %1772 = vmatprep.mubr.bf16.mxu1 %v1503_v36  ;;  %v1502_v48 = vpack.c.bf16 %v1434_v21, %v1432_v52  ;;  %v1437_v13 = vmul.f32 %v1373_v57, %v1245_v10  ;;  %v1449_v36 = vld [vmem:[#allocation2 + $0x28] sm:$0xff]  ;;  %v1450_v10 = vld [vmem:[#allocation2 + $0x30] sm:$0xff] }
 0x1ed   : > { %v2503_v7 = vpop.eup %2502  ;;  %v1439_v14 = vmul.f32 %v1375_v40, %v1247_v3 }
 0x1ee   : > { %v2505_v54 = vpop.eup %2504  ;;  %v1372_v8 = vadd.f32 1.0, %v2503_v7 }
 0x1ef   : > { %v1374_v16 = vadd.f32 1.0, %v2505_v54  ;;  %v2507_v62 = vpop.eup %2506  ;;  %v1505_v60 = vpack.c.bf16 %v1439_v14, %v1437_v13  ;;  %v1451_v54 = vld [vmem:[#allocation2 + $0x38] sm:$0xff] }
 0x1f0   : > { %v2509_v35 = vpop.eup %2508  ;;  %v1436_v15 = vmul.f32 %v1372_v8, %v1244_v12  ;;  %v1377_v0 = vadd.f32 1.0, %v2507_v62 }
 0x1f1   : > { %v1438_v58 = vmul.f32 %v1374_v16, %v1246_v23  ;;  %v1379_v37 = vadd.f32 1.0, %v2509_v35  ;;  %v1452_v16 = vld [vmem:[#allocation2 + $0x40] sm:$0xff] }
 0x1f2   : > { %1773 = vmatmul.mubr.bf16.gmra.mrb[52].mxu1 %v1502_v48  ;;  %v1441_v19 = vmul.f32 %v1377_v0, %v1249_v27 }
 0x1f3   : > { %v2511_v41 = vpop.eup %2510  ;;  %1780 = vmatprep.mubr.bf16.mxu1 %v1505_v60  ;;  %v1504_v32 = vpack.c.bf16 %v1438_v58, %v1436_v15  ;;  %v1443_v33 = vmul.f32 %v1379_v37, %v1251_v38  ;;  %v1453_v15 = vld [vmem:[#allocation2 + $0x48] sm:$0xff] }
 0x1f4   : > { %v2513_v55 = vpop.eup %2512  ;;  %v1376_v1 = vadd.f32 1.0, %v2511_v41  ;;  %v1454_v41 = vld [vmem:[#allocation2 + $0x50] sm:$0xff] }
 0x1f5   : > { %v1378_v29 = vadd.f32 1.0, %v2513_v55  ;;  %v1507_v44 = vpack.c.bf16 %v1443_v33, %v1441_v19  ;;  %v1455_v33 = vld [vmem:[#allocation2 + $0x58] sm:$0xff] }
 0x1f6   : > { %v1440_v9 = vmul.f32 %v1376_v1, %v1248_v50 }
 0x1f7   : > { %v1442_v4 = vmul.f32 %v1378_v29, %v1250_v49 }
 0x1f9   : > { %v1506_v11 = vpack.c.bf16 %v1442_v4, %v1440_v9  ;;  %v1456_v9 = vld [vmem:[#allocation2 + $0x60] sm:$0xff] }
 0x1fa   : > { %1781 = vmatmul.mubr.bf16.gmra.mrb[56].mxu1 %v1504_v32 }
 0x1fb   : > { %1788 = vmatprep.mubr.bf16.mxu1 %v1507_v44 }
 0x202   : > { %1789 = vmatmul.mubr.bf16.gmra.mrb[60].mxu1 %v1506_v11 }
 0x238   : > { %v2144_v56 = vpop.f32.mrb[0].mxu1 }
 0x239   : > { %v2145_v39 = vpop.f32.mrb[1].mxu1 }
 0x23a   : > { %v2146_v51 = vadd.f32 %v2145_v39, %v2144_v56  ;;  %v2147_v18 = vpop.f32.mrb[2].mxu1 }
 0x23b   : > { %v2148_v25 = vpop.f32.mrb[3].mxu1 }
 0x23c   : > { %v1797_v22 = vadd.f32 %v2146_v51, %v1444_v53  ;;  %v2149_v63 = vadd.f32 %v2148_v25, %v2147_v18  ;;  %v1457_v53 = vld [vmem:[#allocation2 + $0x68] sm:$0xff] }
 0x23e   : > { %1829 = vst [vmem:[#allocation2] sm:$0xff] %v1797_v22  ;;  %v1798_v59 = vadd.f32 %v2149_v63, %v1445_v2  ;;  %v1458_v22 = vld [vmem:[#allocation2 + $0x70] sm:$0xff] }
 0x240   : > { %1830 = vst [vmem:[#allocation2 + $0x8] sm:$0xff] %v1798_v59  ;;  %v2150_v20 = vpop.f32.mrb[4].mxu1 }
 0x241   : > { %v2151_v24 = vpop.f32.mrb[5].mxu1 }
 0x242   : > { %v2152_v45 = vadd.f32 %v2151_v24, %v2150_v20  ;;  %v2153_v47 = vpop.f32.mrb[6].mxu1 }
 0x243   : > { %v2154_v31 = vpop.f32.mrb[7].mxu1 }
 0x244   : > { %v1799_v42 = vadd.f32 %v2152_v45, %v1446_v46  ;;  %v2155_v28 = vadd.f32 %v2154_v31, %v2153_v47  ;;  %v1459_v46 = vld [vmem:[#allocation2 + $0x78] sm:$0xff] }
 0x246   : > { %1831 = vst [vmem:[#allocation2 + $0x10] sm:$0xff] %v1799_v42  ;;  %v1800_v5 = vadd.f32 %v2155_v28, %v1447_v43  ;;  %v1460_v42 = vld [vmem:[#allocation2 + $0x80] sm:$0xff] }
 0x248   : > { %1832 = vst [vmem:[#allocation2 + $0x18] sm:$0xff] %v1800_v5 }
 0x250   : > { %v2156_v61 = vpop.f32.mrb[8].mxu1 }
 0x251   : > { %v2157_v30 = vpop.f32.mrb[9].mxu1 }
 0x252   : > { %v2158_v34 = vadd.f32 %v2157_v30, %v2156_v61  ;;  %v2159_v6 = vpop.f32.mrb[10].mxu1 }
 0x253   : > { %v2160_v52 = vpop.f32.mrb[11].mxu1 }
 0x254   : > { %v1801_v21 = vadd.f32 %v2158_v34, %v1448_v17  ;;  %v2161_v26 = vadd.f32 %v2160_v52, %v2159_v6  ;;  %v1461_v17 = vld [vmem:[#allocation2 + $0x88] sm:$0xff] }
 0x256   : > { %1833 = vst [vmem:[#allocation2 + $0x20] sm:$0xff] %v1801_v21  ;;  %v1802_v57 = vadd.f32 %v2161_v26, %v1449_v36  ;;  %v1462_v21 = vld [vmem:[#allocation2 + $0x90] sm:$0xff] }
 0x258   : > { %1834 = vst [vmem:[#allocation2 + $0x28] sm:$0xff] %v1802_v57 }
 0x25b   : > { %v2162_v48 = vpop.f32.mrb[12].mxu1 }
 0x25c   : > { %v2163_v3 = vpop.f32.mrb[13].mxu1 }
 0x25d   : > { %v2164_v40 = vadd.f32 %v2163_v3, %v2162_v48  ;;  %v2165_v7 = vpop.f32.mrb[14].mxu1 }
 0x25e   : > { %v2166_v13 = vpop.f32.mrb[15].mxu1 }
 0x25f   : > { %v1803_v14 = vadd.f32 %v2164_v40, %v1450_v10  ;;  %v2167_v8 = vadd.f32 %v2166_v13, %v2165_v7  ;;  %v1463_v10 = vld [vmem:[#allocation2 + $0x98] sm:$0xff] }
 0x261   : > { %1835 = vst [vmem:[#allocation2 + $0x30] sm:$0xff] %v1803_v14  ;;  %v1804_v12 = vadd.f32 %v2167_v8, %v1451_v54  ;;  %v1464_v14 = vld [vmem:[#allocation2 + $0xa0] sm:$0xff] }
 0x263   : > { %1836 = vst [vmem:[#allocation2 + $0x38] sm:$0xff] %v1804_v12 }
 0x269   : > { %v2168_v23 = vpop.f32.mrb[16].mxu1 }
 0x26a   : > { %v2169_v62 = vpop.f32.mrb[17].mxu1 }
 0x26b   : > { %v2170_v60 = vadd.f32 %v2169_v62, %v2168_v23  ;;  %v2171_v35 = vpop.f32.mrb[18].mxu1 }
 0x26c   : > { %v2172_v58 = vpop.f32.mrb[19].mxu1 }
 0x26d   : > { %v1805_v0 = vadd.f32 %v2170_v60, %v1452_v16  ;;  %v2173_v27 = vadd.f32 %v2172_v58, %v2171_v35  ;;  %v1465_v16 = vld [vmem:[#allocation2 + $0xa8] sm:$0xff] }
 0x26f   : > { %1837 = vst [vmem:[#allocation2 + $0x40] sm:$0xff] %v1805_v0  ;;  %v1806_v38 = vadd.f32 %v2173_v27, %v1453_v15  ;;  %v1466_v0 = vld [vmem:[#allocation2 + $0xb0] sm:$0xff] }
 0x271   : > { %1838 = vst [vmem:[#allocation2 + $0x48] sm:$0xff] %v1806_v38 }
 0x276   : > { %v2174_v37 = vpop.f32.mrb[20].mxu1 }
 0x277   : > { %v2175_v32 = vpop.f32.mrb[21].mxu1 }
 0x278   : > { %v2176_v55 = vadd.f32 %v2175_v32, %v2174_v37  ;;  %v2177_v19 = vpop.f32.mrb[22].mxu1 }
 0x279   : > { %v2178_v1 = vpop.f32.mrb[23].mxu1 }
 0x27a   : > { %v1807_v50 = vadd.f32 %v2176_v55, %v1454_v41  ;;  %v2179_v49 = vadd.f32 %v2178_v1, %v2177_v19  ;;  %v1467_v41 = vld [vmem:[#allocation2 + $0xb8] sm:$0xff] }
 0x27c   : > { %1839 = vst [vmem:[#allocation2 + $0x50] sm:$0xff] %v1807_v50  ;;  %v1808_v29 = vadd.f32 %v2179_v49, %v1455_v33  ;;  %v1468_v50 = vld [vmem:[#allocation2 + $0xc0] sm:$0xff] }
 0x27e   : > { %1840 = vst [vmem:[#allocation2 + $0x58] sm:$0xff] %v1808_v29 }
 0x280   : > { %v2180_v44 = vpop.f32.mrb[24].mxu1 }
 0x281   : > { %v2181_v4 = vpop.f32.mrb[25].mxu1 }
 0x282   : > { %v2182_v11 = vadd.f32 %v2181_v4, %v2180_v44  ;;  %v2183_v56 = vpop.f32.mrb[26].mxu1 }
 0x283   : > { %v2184_v39 = vpop.f32.mrb[27].mxu1 }
 0x284   : > { %v1809_v51 = vadd.f32 %v2182_v11, %v1456_v9  ;;  %v2185_v18 = vadd.f32 %v2184_v39, %v2183_v56  ;;  %v1469_v9 = vld [vmem:[#allocation2 + $0xc8] sm:$0xff] }
 0x286   : > { %1841 = vst [vmem:[#allocation2 + $0x60] sm:$0xff] %v1809_v51  ;;  %v1810_v2 = vadd.f32 %v2185_v18, %v1457_v53  ;;  %v1470_v51 = vld [vmem:[#allocation2 + $0xd0] sm:$0xff] }
 0x288   : > { %1842 = vst [vmem:[#allocation2 + $0x68] sm:$0xff] %v1810_v2 }
 0x28c   : > { %v2186_v25 = vpop.f32.mrb[28].mxu1 }
 0x28d   : > { %v2187_v63 = vpop.f32.mrb[29].mxu1 }
 0x28e   : > { %v2188_v59 = vadd.f32 %v2187_v63, %v2186_v25  ;;  %v2189_v20 = vpop.f32.mrb[30].mxu1 }
 0x28f   : > { %v2190_v24 = vpop.f32.mrb[31].mxu1 }
 0x290   : > { %v1811_v45 = vadd.f32 %v2188_v59, %v1458_v22  ;;  %v2191_v47 = vadd.f32 %v2190_v24, %v2189_v20  ;;  %v1471_v22 = vld [vmem:[#allocation2 + $0xd8] sm:$0xff] }
 0x292   : > { %1843 = vst [vmem:[#allocation2 + $0x70] sm:$0xff] %v1811_v45  ;;  %v1812_v43 = vadd.f32 %v2191_v47, %v1459_v46  ;;  %v1472_v45 = vld [vmem:[#allocation2 + $0xe0] sm:$0xff] }
 0x294   : > { %1844 = vst [vmem:[#allocation2 + $0x78] sm:$0xff] %v1812_v43 }
 0x296   : > { %v2192_v31 = vpop.f32.mrb[32].mxu1 }
 0x297   : > { %v2193_v28 = vpop.f32.mrb[33].mxu1 }
 0x298   : > { %v2194_v5 = vadd.f32 %v2193_v28, %v2192_v31  ;;  %v2195_v61 = vpop.f32.mrb[34].mxu1 }
 0x299   : > { %v2196_v30 = vpop.f32.mrb[35].mxu1 }
 0x29a   : > { %v1813_v34 = vadd.f32 %v2194_v5, %v1460_v42  ;;  %v2197_v6 = vadd.f32 %v2196_v30, %v2195_v61  ;;  %v1473_v42 = vld [vmem:[#allocation2 + $0xe8] sm:$0xff] }
 0x29c   : > { %1845 = vst [vmem:[#allocation2 + $0x80] sm:$0xff] %v1813_v34  ;;  %v1814_v36 = vadd.f32 %v2197_v6, %v1461_v17  ;;  %v1474_v34 = vld [vmem:[#allocation2 + $0xf0] sm:$0xff] }
 0x29e   : > { %1846 = vst [vmem:[#allocation2 + $0x88] sm:$0xff] %v1814_v36 }
 0x29f   : > { %v2198_v52 = vpop.f32.mrb[36].mxu1 }
 0x2a0   : > { %v2199_v26 = vpop.f32.mrb[37].mxu1 }
 0x2a1   : > { %v2200_v57 = vadd.f32 %v2199_v26, %v2198_v52  ;;  %v2201_v48 = vpop.f32.mrb[38].mxu1 }
 0x2a2   : > { %v2202_v3 = vpop.f32.mrb[39].mxu1 }
 0x2a3   : > { %v1815_v40 = vadd.f32 %v2200_v57, %v1462_v21  ;;  %v2203_v7 = vadd.f32 %v2202_v3, %v2201_v48  ;;  %v1475_v21 = vld [vmem:[#allocation2 + $0xf8] sm:$0xff]  ;;  %v1865_v3 = vld [vmem:[#allocation2] sm:$0xff] (!%p2120_p7) }
 0x2a4   : > { %1897 = vst [vmem:[%s2803_s28] sm:$0xff] (!%p2120_p7), %v1865_v3 }
 0x2a5   : > { %1847 = vst [vmem:[#allocation2 + $0x90] sm:$0xff] %v1815_v40  ;;  %v1816_v54 = vadd.f32 %v2203_v7, %v1463_v10  ;;  %v1866_v40 = vld [vmem:[#allocation2 + $0x8] sm:$0xff] (!%p2120_p7)  ;;  %v1867_v7 = vld [vmem:[#allocation2 + $0x10] sm:$0xff] (!%p2120_p7) }
 0x2a6   : > { %1898 = vst [vmem:[%s2803_s28 + $0x8] sm:$0xff] (!%p2120_p7), %v1866_v40  ;;  %1899 = vst [vmem:[%s2803_s28 + $0x10] sm:$0xff] (!%p2120_p7), %v1867_v7 }
 0x2a7   : > { %1848 = vst [vmem:[#allocation2 + $0x98] sm:$0xff] %v1816_v54  ;;  %v1868_v54 = vld [vmem:[#allocation2 + $0x18] sm:$0xff] (!%p2120_p7) }
 0x2a8   : > { %1900 = vst [vmem:[%s2803_s28 + $0x18] sm:$0xff] (!%p2120_p7), %v1868_v54 }
 0x2ab   : > { %v2204_v13 = vpop.f32.mrb[40].mxu1 }
 0x2ac   : > { %v2205_v8 = vpop.f32.mrb[41].mxu1 }
 0x2ad   : > { %v2206_v12 = vadd.f32 %v2205_v8, %v2204_v13  ;;  %v2207_v23 = vpop.f32.mrb[42].mxu1  ;;  %v1869_v13 = vld [vmem:[#allocation2 + $0x20] sm:$0xff] (!%p2120_p7)  ;;  %v1871_v8 = vld [vmem:[#allocation2 + $0x30] sm:$0xff] (!%p2120_p7) }
 0x2ae   : > { %v2208_v62 = vpop.f32.mrb[43].mxu1  ;;  %1901 = vst [vmem:[%s2803_s28 + $0x20] sm:$0xff] (!%p2120_p7), %v1869_v13  ;;  %1903 = vst [vmem:[%s2803_s28 + $0x30] sm:$0xff] (!%p2120_p7), %v1871_v8 }
 0x2af   : > { %v1817_v60 = vadd.f32 %v2206_v12, %v1464_v14  ;;  %v2209_v35 = vadd.f32 %v2208_v62, %v2207_v23  ;;  %v1870_v14 = vld [vmem:[#allocation2 + $0x28] sm:$0xff] (!%p2120_p7)  ;;  %v1872_v12 = vld [vmem:[#allocation2 + $0x38] sm:$0xff] (!%p2120_p7)  ;;  %v1873_v23 = vld [vmem:[#allocation2 + $0x40] sm:$0xff] (!%p2120_p7) }
 0x2b0   : > { %1902 = vst [vmem:[%s2803_s28 + $0x28] sm:$0xff] (!%p2120_p7), %v1870_v14  ;;  %1904 = vst [vmem:[%s2803_s28 + $0x38] sm:$0xff] (!%p2120_p7), %v1872_v12  ;;  %v1875_v62 = vld [vmem:[#allocation2 + $0x50] sm:$0xff] (!%p2120_p7) }
 0x2b1   : > { %1849 = vst [vmem:[#allocation2 + $0xa0] sm:$0xff] %v1817_v60  ;;  %v1818_v15 = vadd.f32 %v2209_v35, %v1465_v16  ;;  %1905 = vst [vmem:[%s2803_s28 + $0x40] sm:$0xff] (!%p2120_p7), %v1873_v23  ;;  %v1874_v16 = vld [vmem:[#allocation2 + $0x48] sm:$0xff] (!%p2120_p7)  ;;  %v1876_v60 = vld [vmem:[#allocation2 + $0x58] sm:$0xff] (!%p2120_p7) }
 0x2b2   : > { %1906 = vst [vmem:[%s2803_s28 + $0x48] sm:$0xff] (!%p2120_p7), %v1874_v16  ;;  %1907 = vst [vmem:[%s2803_s28 + $0x50] sm:$0xff] (!%p2120_p7), %v1875_v62  ;;  %v1877_v35 = vld [vmem:[#allocation2 + $0x60] sm:$0xff] (!%p2120_p7) }
 0x2b3   : > { %1850 = vst [vmem:[#allocation2 + $0xa8] sm:$0xff] %v1818_v15  ;;  %1908 = vst [vmem:[%s2803_s28 + $0x58] sm:$0xff] (!%p2120_p7), %v1876_v60  ;;  %v1878_v15 = vld [vmem:[#allocation2 + $0x68] sm:$0xff] (!%p2120_p7) }
 0x2b4   : > { %1909 = vst [vmem:[%s2803_s28 + $0x60] sm:$0xff] (!%p2120_p7), %v1877_v35  ;;  %1910 = vst [vmem:[%s2803_s28 + $0x68] sm:$0xff] (!%p2120_p7), %v1878_v15 }
 0x2b5   : > { %v2210_v58 = vpop.f32.mrb[44].mxu1 }
 0x2b6   : > { %v2211_v27 = vpop.f32.mrb[45].mxu1 }
 0x2b7   : > { %v2212_v38 = vadd.f32 %v2211_v27, %v2210_v58  ;;  %v2213_v37 = vpop.f32.mrb[46].mxu1  ;;  %v1879_v58 = vld [vmem:[#allocation2 + $0x70] sm:$0xff] (!%p2120_p7)  ;;  %v1881_v27 = vld [vmem:[#allocation2 + $0x80] sm:$0xff] (!%p2120_p7) }
 0x2b8   : > { %v2214_v32 = vpop.f32.mrb[47].mxu1  ;;  %1911 = vst [vmem:[%s2803_s28 + $0x70] sm:$0xff] (!%p2120_p7), %v1879_v58  ;;  %1913 = vst [vmem:[%s2803_s28 + $0x80] sm:$0xff] (!%p2120_p7), %v1881_v27 }
 0x2b9   : > { %v1819_v55 = vadd.f32 %v2212_v38, %v1466_v0  ;;  %v2215_v19 = vadd.f32 %v2214_v32, %v2213_v37  ;;  %v1880_v0 = vld [vmem:[#allocation2 + $0x78] sm:$0xff] (!%p2120_p7)  ;;  %v1882_v38 = vld [vmem:[#allocation2 + $0x88] sm:$0xff] (!%p2120_p7)  ;;  %v1883_v37 = vld [vmem:[#allocation2 + $0x90] sm:$0xff] (!%p2120_p7) }
 0x2ba   : > { %1912 = vst [vmem:[%s2803_s28 + $0x78] sm:$0xff] (!%p2120_p7), %v1880_v0  ;;  %1914 = vst [vmem:[%s2803_s28 + $0x88] sm:$0xff] (!%p2120_p7), %v1882_v38  ;;  %v1885_v32 = vld [vmem:[#allocation2 + $0xa0] sm:$0xff] (!%p2120_p7) }
 0x2bb   : > { %1851 = vst [vmem:[#allocation2 + $0xb0] sm:$0xff] %v1819_v55  ;;  %v1820_v33 = vadd.f32 %v2215_v19, %v1467_v41  ;;  %v1884_v41 = vld [vmem:[#allocation2 + $0x98] sm:$0xff] (!%p2120_p7)  ;;  %1915 = vst [vmem:[%s2803_s28 + $0x90] sm:$0xff] (!%p2120_p7), %v1883_v37  ;;  %v1886_v55 = vld [vmem:[#allocation2 + $0xa8] sm:$0xff] (!%p2120_p7) }
 0x2bc   : > { %1916 = vst [vmem:[%s2803_s28 + $0x98] sm:$0xff] (!%p2120_p7), %v1884_v41  ;;  %1917 = vst [vmem:[%s2803_s28 + $0xa0] sm:$0xff] (!%p2120_p7), %v1885_v32 }
 0x2bd   : > { %1852 = vst [vmem:[#allocation2 + $0xb8] sm:$0xff] %v1820_v33  ;;  %v2216_v1 = vpop.f32.mrb[48].mxu1  ;;  %1918 = vst [vmem:[%s2803_s28 + $0xa8] sm:$0xff] (!%p2120_p7), %v1886_v55 }
 0x2be   : > { %v2217_v49 = vpop.f32.mrb[49].mxu1 }
 0x2bf   : > { %v2218_v29 = vadd.f32 %v2217_v49, %v2216_v1  ;;  %v2219_v44 = vpop.f32.mrb[50].mxu1 }
 0x2c0   : > { %v2220_v4 = vpop.f32.mrb[51].mxu1 }
 0x2c1   : > { %v1821_v11 = vadd.f32 %v2218_v29, %v1468_v50  ;;  %v2221_v56 = vadd.f32 %v2220_v4, %v2219_v44 }
 0x2c2   : > { %v1887_v19 = vld [vmem:[#allocation2 + $0xb0] sm:$0xff] (!%p2120_p7) }
 0x2c3   : > { %1853 = vst [vmem:[#allocation2 + $0xc0] sm:$0xff] %v1821_v11  ;;  %v1822_v53 = vadd.f32 %v2221_v56, %v1469_v9  ;;  %1919 = vst [vmem:[%s2803_s28 + $0xb0] sm:$0xff] (!%p2120_p7), %v1887_v19 }
 0x2c4   : > { %v1888_v33 = vld [vmem:[#allocation2 + $0xb8] sm:$0xff] (!%p2120_p7) }
 0x2c5   : > { %1854 = vst [vmem:[#allocation2 + $0xc8] sm:$0xff] %v1822_v53  ;;  %v2222_v39 = vpop.f32.mrb[52].mxu1  ;;  %1920 = vst [vmem:[%s2803_s28 + $0xb8] sm:$0xff] (!%p2120_p7), %v1888_v33 }
 0x2c6   : > { %v2223_v18 = vpop.f32.mrb[53].mxu1 }
 0x2c7   : > { %v2224_v2 = vadd.f32 %v2223_v18, %v2222_v39  ;;  %v2225_v25 = vpop.f32.mrb[54].mxu1 }
 0x2c8   : > { %v2226_v63 = vpop.f32.mrb[55].mxu1 }
 0x2c9   : > { %v1823_v59 = vadd.f32 %v2224_v2, %v1470_v51  ;;  %v2227_v20 = vadd.f32 %v2226_v63, %v2225_v25 }
 0x2ca   : > { %v1889_v1 = vld [vmem:[#allocation2 + $0xc0] sm:$0xff] (!%p2120_p7) }
 0x2cb   : > { %1855 = vst [vmem:[#allocation2 + $0xd0] sm:$0xff] %v1823_v59  ;;  %v1824_v46 = vadd.f32 %v2227_v20, %v1471_v22  ;;  %1921 = vst [vmem:[%s2803_s28 + $0xc0] sm:$0xff] (!%p2120_p7), %v1889_v1 }
 0x2cc   : > { %v1890_v50 = vld [vmem:[#allocation2 + $0xc8] sm:$0xff] (!%p2120_p7) }
 0x2cd   : > { %1856 = vst [vmem:[#allocation2 + $0xd8] sm:$0xff] %v1824_v46  ;;  %v2228_v24 = vpop.f32.mrb[56].mxu1  ;;  %1922 = vst [vmem:[%s2803_s28 + $0xc8] sm:$0xff] (!%p2120_p7), %v1890_v50 }
 0x2ce   : > { %v2229_v47 = vpop.f32.mrb[57].mxu1 }
 0x2cf   : > { %v2230_v43 = vadd.f32 %v2229_v47, %v2228_v24  ;;  %v2231_v31 = vpop.f32.mrb[58].mxu1 }
 0x2d0   : > { %v2232_v28 = vpop.f32.mrb[59].mxu1 }
 0x2d1   : > { %v1825_v5 = vadd.f32 %v2230_v43, %v1472_v45  ;;  %v2233_v61 = vadd.f32 %v2232_v28, %v2231_v31 }
 0x2d2   : > { %v1891_v49 = vld [vmem:[#allocation2 + $0xd0] sm:$0xff] (!%p2120_p7) }
 0x2d3   : > { %1857 = vst [vmem:[#allocation2 + $0xe0] sm:$0xff] %v1825_v5  ;;  %v1826_v17 = vadd.f32 %v2233_v61, %v1473_v42  ;;  %1923 = vst [vmem:[%s2803_s28 + $0xd0] sm:$0xff] (!%p2120_p7), %v1891_v49 }
 0x2d4   : > { %v1892_v29 = vld [vmem:[#allocation2 + $0xd8] sm:$0xff] (!%p2120_p7) }
 0x2d5   : > { %1858 = vst [vmem:[#allocation2 + $0xe8] sm:$0xff] %v1826_v17  ;;  %v2234_v30 = vpop.f32.mrb[60].mxu1  ;;  %1924 = vst [vmem:[%s2803_s28 + $0xd8] sm:$0xff] (!%p2120_p7), %v1892_v29 }
 0x2d6   : > { %v2235_v6 = vpop.f32.mrb[61].mxu1 }
 0x2d7   : > { %v2236_v36 = vadd.f32 %v2235_v6, %v2234_v30  ;;  %v2237_v52 = vpop.f32.mrb[62].mxu1  ;;  %1864 = sbr.rel (%p2120_p7) target bundleno = 742 (0x2e6), region = 86 }
 0x2d8   : > { %v2238_v26 = vpop.f32.mrb[63].mxu1 }
 0x2d9   : > { %v1827_v57 = vadd.f32 %v2236_v36, %v1474_v34  ;;  %v2239_v48 = vadd.f32 %v2238_v26, %v2237_v52 }
 0x2da   : > { %v1893_v44 = vld [vmem:[#allocation2 + $0xe0] sm:$0xff] (!%p2120_p7) }
 0x2db   : > { %1859 = vst [vmem:[#allocation2 + $0xf0] sm:$0xff] %v1827_v57  ;;  %v1828_v10 = vadd.f32 %v2239_v48, %v1475_v21  ;;  %1925 = vst [vmem:[%s2803_s28 + $0xe0] sm:$0xff] (!%p2120_p7), %v1893_v44 }
 0x2dc   : > { %v1894_v9 = vld [vmem:[#allocation2 + $0xe8] sm:$0xff] (!%p2120_p7) }
 0x2dd   : > { %1860 = vst [vmem:[#allocation2 + $0xf8] sm:$0xff] %v1828_v10  ;;  %1926 = vst [vmem:[%s2803_s28 + $0xe8] sm:$0xff] (!%p2120_p7), %v1894_v9 }
 0x2e2   : > { %v1895_v4 = vld [vmem:[#allocation2 + $0xf0] sm:$0xff] }
 0x2e3   : > { %1927 = vst [vmem:[%s2803_s28 + $0xf0] sm:$0xff] %v1895_v4 }
 0x2e4   : > { %v1896_v11 = vld [vmem:[#allocation2 + $0xf8] sm:$0xff] }
 0x2e5   : > { %1928 = vst [vmem:[%s2803_s28 + $0xf8] sm:$0xff] %v1896_v11 }
 0x2e6 PF: > { %s2127_s23 = sshll.u32 %s2612_s24, 12  ;;  %s1943_s11 = sshll.u32 %s2803_s28, 4  ;;  %s3561_s11 = int_to_ptr.vmem [resolvable:$true] %s1943_s11 }
 0x2e7   : > { %s3558_s6 = scalar_lea.hbm %s3628_s5, %s2127_s23  ;;  %s3646_s12 = sand.u32 1, %s2592_s19  }
 0x2e8   : > { %s3565_s16 = scalar_lea.sflag [#allocation5], %s3646_s12  ;;  %s2514_s17 = scalar_lea.vmem %s3561_s11, 4096 }
 0x2e9   : > { %p2515_p8 = scmp.ne.s32.totalorder %s3561_s11, %s2514_s17  ;;  %s2627_s24 = smov [#allocation4]  }
 0x2ea   : > { %s2518_s7 = sshll.u32 %s2627_s24, 4  ;;  %s2519_s7 = int_to_ptr.vmem [resolvable:$false] %s2518_s7 }
 0x2eb   : > { %p2516_p9 = pnand %p2515_p8, %p2739_p10  ;;  %s2520_s8 = scalar_lea.vmem %s2519_s7, 8192 }
 0x2ec   : > { %p2521_p13 = scmp.lt.s32.totalorder %s3561_s11, %s2519_s7  ;;  %p2522_p0 = scmp.lt.s32.totalorder %s2520_s8, %s2514_s17 }
 0x2ed   : > { %p2517_p11 = pneg %p2516_p9 }
 0x2ee   : > { %p2523_p1 = por %p2522_p0, %p2521_p13 }
 0x2f0   : > { %p2524_p2 = pnand %p2523_p1, %p2517_p11 }
 0x2f2   : > { %2527 = shalt.err (!%p2524_p2)
}
 0x2f3   : > { %s2528_s9 = scalar_lea.hbm %s3558_s6, 4096  ;;  %s2532_s28 = scalar_lea.hbm %s3628_s5, 8192 }
 0x2f4   : > { %p2529_p3 = scmp.ne.s32.totalorder %s3558_s6, %s2528_s9  ;;  %p2533_p6 = scmp.lt.u32.totalorder %s3558_s6, %s3628_s5 }
 0x2f5   : > { %p2534_p7 = scmp.lt.u32.totalorder %s2532_s28, %s2528_s9  ;;  %p2536_p9 = scmp.lt.u32.totalorder %s2528_s9, %s3558_s6 }
 0x2f6   : > { %p2530_p4 = pnand %p2529_p3, %p2739_p10 }
 0x2f7   : > { %p2535_p8 = por %p2534_p7, %p2533_p6 }
 0x2f8   : > { %p2531_p5 = pneg %p2530_p4 }
 0x2f9   : > { %p2537_p11 = por %p2536_p9, %p2535_p8 }
 0x2fb   : > { %p2538_p13 = pnand %p2537_p11, %p2531_p5 }
 0x2fd   : > { %2541 = shalt.err (!%p2538_p13)
}
 0x2fe   : > { %s2628_s22 = smov 128   ;;  %s2629_s25 = smov 8  }
 0x2ff   : > { %2240 = dma.vmem_to_hbm [thread:$0]  (%p2739_p10), %s3561_s11, 4096, %s3558_s6, %s3565_s16, %s2628_s22, %s2628_s22, %s2629_s25  }
 0x300 PF: > { %p2246_p0 = scmp.ge.s32.totalorder %s2624_s27, 2  ;;  %s1958_s23 = sand.u32 1, %s2588_s18  }
 0x301   : > { %s1959_s26 = scalar_lea.sflag [#allocation5], %s1958_s23 }
 0x302   : > { %p2243_p1 = pnand %p2246_p0, %p2746_p12 }
 0x304   : > { %2583 = dma.done.wait (!%p2243_p1), %s1959_s26, 4096  }
 0x305   : > { %2585 = vsyncadd (!%p2243_p1), %s1959_s26, 4294963200  ;;  %s18_s27 = sadd.s32 1, %s2624_s27   ;;  %s3647_s21 = sld [smem:[#allocation7_spill]] }
 0x306   : > { %p15_p2 = scmp.ge.s32.totalorder %s18_s27, 6   ;;  %s3648_s22 = sld [smem:[#allocation12_spill]] }
 0x307   : > { %s3649_s23 = sld [smem:[#allocation8_spill]]  ;;  %s3650_s24 = sld [smem:[#allocation9_spill]] }
 0x308   : > { %s3651_s25 = sld [smem:[#allocation10_spill]]  ;;  %s3652_s26 = sld [smem:[#allocation11_spill]] }
 0x309   : > { %s3653_s18 = smov %s2592_s19  ;;  %s3654_s19 = smov %s2596_s20 }
 0x30a   : > { %s3655_s20 = smov %s2744_s14  ;;  %17 = sbr.rel (!%p15_p2) target bundleno = 8 (0x8), region = 135 }
 0x311   :  { %1964 = vsyncpa [#allocation5], 1 }
 0x312   :  { %1966 = vsyncpa [#allocation5 + $0x1], 1 }

</bundles_post_ra>
